<compile_context>
chip_gen: v7x
topology: tpu7x:2x2x1
jax: 0.10.0
libtpu: 0.0.40
codegen_flags: <defaults>
</compile_context>

<pallas_src>
import numpy as np
import jax
import jax.numpy as jnp
from jax.experimental import pallas as pl
from jax.experimental.pallas import tpu as pltpu

# --- configuration constants (cfg.OAGCNN.*) ---
MESSAGE_PASSING_STEPS = 2
USE_TEMPORAL_FEATURES = True

P_TILE_TARGET = 2048   # pixels per grid step (largest multiple-of-8 divisor of P <= this)


def _make_kernel(msg_steps, use_temporal):
    def kernel(feats_ref, maskpix_ref, valid_ref, vmask_ref, prev_ref,
               w_enc_f_ref, m_enc_ref, b_enc_ref,
               w_step_ref, w_temp_ref, b_g_ref,
               r_ro_ref, w_ro_f_ref, b_ro_ref,
               out_probs_ref, out_states_ref):
        feats = feats_ref[0]          # (Pt, Cin)
        maskpix = maskpix_ref[0]      # (Pt, N)
        valid_row = valid_ref[0]      # (1, N)    float {0,1}
        vmask = vmask_ref[0]          # (1, NC)   per-slot validity mask
        w_step = w_step_ref[0]        # (NC, NC)  self + mean-neighbor, per batch
        b_g = b_g_ref[...]            # (1, NC)

        # ---- mask encoder: one fused 1x1 conv for all objects --------------
        enc = (jnp.dot(feats, w_enc_f_ref[...],
                       preferred_element_type=jnp.float32)
               + jnp.dot(maskpix, m_enc_ref[...],
                         preferred_element_type=jnp.float32)
               + b_enc_ref[...])
        states = jnp.maximum(enc, 0.0) * vmask                     # (Pt, NC)

        # ---- message passing: one/two (Pt, NC) @ (NC, NC) matmuls per step -
        for k in range(msg_steps):
            z = jnp.dot(states, w_step,
                        preferred_element_type=jnp.float32) + b_g
            if k == 0 and use_temporal:
                z = z + jnp.dot(prev_ref[0], w_temp_ref[...],
                                preferred_element_type=jnp.float32)
            states = jnp.maximum(z, 0.0) * vmask

        # lane-dense (Pt, NC) store of the new recurrent state
        out_states_ref[0] = states.astype(out_states_ref.dtype)

        # ---- read-out (Cout == 1 per object), fused across objects ---------
        logits = (jnp.dot(states, r_ro_ref[...],
                          preferred_element_type=jnp.float32)
                  + jnp.dot(feats, w_ro_f_ref[...],
                            preferred_element_type=jnp.float32)
                  + b_ro_ref[...])                                  # (Pt, N)
        out_probs_ref[0] = (jax.nn.sigmoid(logits) * valid_row).astype(
            out_probs_ref.dtype)

    return kernel


def _prep_weights(params, n_obj, valid_f):
    """Fused / block-structured weight matrices (plain JAX, tiny)."""
    eye = jnp.eye(n_obj, dtype=jnp.float32)
    off = 1.0 - eye
    # per-batch neighbor-mean denominator folded into the step weight once
    n_valid = jnp.sum(valid_f, axis=-1, keepdims=True)              # (B,1,1)
    inv_denom = 1.0 / jnp.maximum(n_valid - 1.0, 1.0)               # (B,1,1)
    w_step = (jnp.kron(eye, params["w_self"])[None]
              + inv_denom * jnp.kron(off, params["w_neigh"])[None])  # (B,NC,NC)
    return [
        jnp.tile(params["w_enc_f"], (1, n_obj)),        # (Cin, NC)
        jnp.kron(eye, params["w_enc_m"]),               # (N,   NC) block-diag rows
        jnp.tile(params["b_enc"], (1, n_obj)),          # (1,   NC)
        w_step,                                         # (B, NC, NC)
        jnp.kron(eye, params["w_temp"]),                # (NC,  NC) block-diag
        jnp.tile(params["b_g"], (1, n_obj)),            # (1,   NC)
        jnp.kron(eye, params["w_ro_s"]),                # (NC,  N)  block-diag cols
        jnp.tile(params["w_ro_f"], (1, n_obj)),         # (Cin, N)
        jnp.tile(params["b_ro"], (1, n_obj)),           # (1,   N)
    ]


def pack_states(states_nchw):
    """(B, N, Chid, H, W) -> packed recurrent layout (B, H*W, N*Chid)."""
    B, N, C, H, W = states_nchw.shape
    return jnp.transpose(states_nchw, (0, 3, 4, 1, 2)).reshape(B, H * W, N * C)


def unpack_states(packed, n_obj, chid, H, W):
    """packed (B, H*W, N*Chid) -> (B, N, Chid, H, W) (PyTorch layout)."""
    B = packed.shape[0]
    return jnp.transpose(packed.reshape(B, H, W, n_obj, chid), (0, 3, 4, 1, 2))


def _pick_tile(P, target=P_TILE_TARGET):
    best = 8
    for cand in range(8, min(target, P) + 1, 8):
        if P % cand == 0:
            best = cand
    return best


def gcnn_temporal_forward(feats_nchw, prev_masks, valid, prev_states_packed,
                          params, p_tile=P_TILE_TARGET):
    """feats_nchw: (B, Cin, H, W); prev_masks: (B, N, H, W);
    valid: (B, N) {0,1}; prev_states_packed: (B, H*W, N*Chid) or None.
    Returns (out_masks (B, N, H, W), out_states_packed (B, H*W, N*Chid)).
    Feed out_states_packed back as prev_states_packed next frame."""
    B, Cin, H, W = feats_nchw.shape
    N = prev_masks.shape[1]
    P = H * W
    Chid = params["w_self"].shape[0]
    NC = N * Chid

    assert P % 8 == 0, "H*W must be a multiple of 8"
    pt = _pick_tile(P, p_tile)

    # upstream (backbone) features are NCHW -> pixel-major channel-last
    feats_p = jnp.transpose(feats_nchw, (0, 2, 3, 1)).reshape(B, P, Cin)
    # masks: pixel-major with objects in lanes (tiny tensor, cheap transpose)
    maskpix = jnp.transpose(prev_masks.reshape(B, N, P), (0, 2, 1))   # (B, P, N)
    valid_f = valid.astype(jnp.float32).reshape(B, 1, N)
    vmask = jnp.repeat(valid_f, Chid, axis=-1)                        # (B, 1, NC)
    if prev_states_packed is None:
        prev_states_packed = jnp.zeros((B, P, NC), jnp.float32)

    weights = _prep_weights(params, N, valid_f)

    def _const2d(shape):
        return pl.BlockSpec(shape, lambda b, p: (0, 0))

    in_specs = [
        pl.BlockSpec((1, pt, Cin), lambda b, p: (b, p, 0)),
        pl.BlockSpec((1, pt, N),   lambda b, p: (b, p, 0)),
        pl.BlockSpec((1, 1, N),    lambda b, p: (b, 0, 0)),
        pl.BlockSpec((1, 1, NC),   lambda b, p: (b, 0, 0)),
        pl.BlockSpec((1, pt, NC),  lambda b, p: (b, p, 0)),
        _const2d((Cin, NC)),
        _const2d((N, NC)),
        _const2d((1, NC)),
        pl.BlockSpec((1, NC, NC),  lambda b, p: (b, 0, 0)),
        _const2d((NC, NC)),
        _const2d((1, NC)),
        _const2d((NC, N)),
        _const2d((Cin, N)),
        _const2d((1, N)),
    ]

    out_specs = [
        pl.BlockSpec((1, pt, N),  lambda b, p: (b, p, 0)),
        pl.BlockSpec((1, pt, NC), lambda b, p: (b, p, 0)),
    ]
    out_shape = (
        jax.ShapeDtypeStruct((B, P, N), jnp.float32),
        jax.ShapeDtypeStruct((B, P, NC), jnp.float32),
    )

    kernel = _make_kernel(MESSAGE_PASSING_STEPS, USE_TEMPORAL_FEATURES)

    out_probs, out_states_packed = pl.pallas_call(
        kernel,
        out_shape=out_shape,
        grid_spec=pltpu.PrefetchScalarGridSpec(
            num_scalar_prefetch=0,
            grid=(B, P // pt),
            in_specs=in_specs,
            out_specs=out_specs,
        ),
        compiler_params=pltpu.CompilerParams(
            dimension_semantics=("parallel", "parallel")),
    )(feats_p, maskpix, valid_f, vmask, prev_states_packed, *weights)

    # (B, P, N) -> module's (B, N, H, W) mask format (tiny XLA transpose)
    out_masks = jnp.transpose(out_probs, (0, 2, 1)).reshape(B, N, H, W)
    return out_masks, out_states_packed


def _reference(feats_nchw, prev_masks, valid, prev_states, params):
    """Pure-numpy reference with true boolean-index semantics (like PyTorch)."""
    feats_nchw = np.asarray(feats_nchw, np.float32)
    prev_masks = np.asarray(prev_masks, np.float32)
    valid = np.asarray(valid)
    prev_states = np.asarray(prev_states, np.float32)
    p = {k: np.asarray(v, np.float32) for k, v in params.items()}

    B, Cin, H, W = feats_nchw.shape
    N = prev_masks.shape[1]
    P = H * W
    Chid = p["w_self"].shape[0]

    feats = feats_nchw.transpose(0, 2, 3, 1).reshape(B, P, Cin)
    masks = prev_masks.reshape(B, N, P, 1)
    prev = prev_states.transpose(0, 1, 3, 4, 2).reshape(B, N, P, Chid)

    out_masks = np.zeros((B, N, P, 1), np.float32)
    out_states = np.zeros((B, N, P, Chid), np.float32)

    for b in range(B):
        idx = np.where(valid[b] > 0)[0]
        F = feats[b]
        states = []
        for i in idx:
            s = F @ p["w_enc_f"] + masks[b, i] * p["w_enc_m"] + p["b_enc"]
            states.append(np.maximum(s, 0.0))
        for k in range(MESSAGE_PASSING_STEPS):
            if not states:
                break
            total = sum(states)
            denom = max(len(states) - 1, 1)
            new_states = []
            for ii, i in enumerate(idx):
                neigh = (total - states[ii]) / denom
                z = states[ii] @ p["w_self"] + neigh @ p["w_neigh"] + p["b_g"]
                if k == 0 and USE_TEMPORAL_FEATURES:
                    z = z + prev[b, i] @ p["w_temp"]
                new_states.append(np.maximum(z, 0.0))
            states = new_states
        for ii, i in enumerate(idx):
            logits = F @ p["w_ro_f"] + states[ii] @ p["w_ro_s"] + p["b_ro"]
            out_masks[b, i] = 1.0 / (1.0 + np.exp(-logits))
            out_states[b, i] = states[ii]

    return (out_masks.reshape(B, N, H, W),
            out_states.reshape(B, N, H, W, Chid).transpose(0, 1, 4, 2, 3))


if __name__ == "__main__":
    B, Cin, H, W = 2, 4, 16, 16
    N_OBJ, C_HID = 4, 32          # N_OBJ * C_HID = 128 -> fully lane-dense

    key = jax.random.PRNGKey(0)
    keys = jax.random.split(key, 16)

    feats = jax.random.normal(keys[0], (B, Cin, H, W), jnp.float32)
    prev_masks = jax.nn.sigmoid(
        jax.random.normal(keys[1], (B, N_OBJ, H, W), jnp.float32))
    # boolean valid indices per batch element (object 3 of batch 0 is invalid)
    valid = jnp.array([[1, 1, 1, 0], [1, 1, 1, 1]], jnp.float32)
    prev_states = 0.5 * jax.random.normal(
        keys[2], (B, N_OBJ, C_HID, H, W), jnp.float32)

    sc = 0.1
    params = {
        "w_enc_f": sc * jax.random.normal(keys[3], (Cin, C_HID), jnp.float32),
        "w_enc_m": sc * jax.random.normal(keys[4], (1, C_HID), jnp.float32),
        "b_enc":   sc * jax.random.normal(keys[5], (1, C_HID), jnp.float32),
        "w_self":  sc * jax.random.normal(keys[6], (C_HID, C_HID), jnp.float32),
        "w_neigh": sc * jax.random.normal(keys[7], (C_HID, C_HID), jnp.float32),
        "w_temp":  sc * jax.random.normal(keys[8], (C_HID, C_HID), jnp.float32),
        "b_g":     sc * jax.random.normal(keys[9], (1, C_HID), jnp.float32),
        "w_ro_f":  sc * jax.random.normal(keys[10], (Cin, 1), jnp.float32),
        "w_ro_s":  sc * jax.random.normal(keys[11], (C_HID, 1), jnp.float32),
        "b_ro":    sc * jax.random.normal(keys[12], (1, 1), jnp.float32),
    }

    prev_packed = pack_states(prev_states)     # kernel-native recurrent layout
    out_masks, out_states_packed = gcnn_temporal_forward(
        feats, prev_masks, valid, prev_packed, params)
    jax.block_until_ready((out_masks, out_states_packed))

    # reference check (PyTorch-layout conversion is test-only)
    out_states = unpack_states(out_states_packed, N_OBJ, C_HID, H, W)
    ref_masks, ref_states = _reference(feats, prev_masks, valid, prev_states,
                                       params)
    np.testing.assert_allclose(np.asarray(out_masks), ref_masks,
                               rtol=1e-4, atol=1e-4)
    np.testing.assert_allclose(np.asarray(out_states), ref_states,
                               rtol=1e-4, atol=1e-4)
    print("KERNEL_OK")
</pallas_src>

<mosaic_0001>
module attributes {stable_mosaic.version = 11 : i64} {
  func.func @kernel(%arg0: i32, %arg1: i32, %arg2: memref<1x256x4xf32, #tpu.memory_space<vmem>>, %arg3: memref<1x256x4xf32, #tpu.memory_space<vmem>>, %arg4: memref<1x1x4xf32, #tpu.memory_space<vmem>>, %arg5: memref<1x1x128xf32, #tpu.memory_space<vmem>>, %arg6: memref<1x256x128xf32, #tpu.memory_space<vmem>>, %arg7: memref<4x128xf32, #tpu.memory_space<vmem>>, %arg8: memref<4x128xf32, #tpu.memory_space<vmem>>, %arg9: memref<1x128xf32, #tpu.memory_space<vmem>>, %arg10: memref<1x128x128xf32, #tpu.memory_space<vmem>>, %arg11: memref<128x128xf32, #tpu.memory_space<vmem>>, %arg12: memref<1x128xf32, #tpu.memory_space<vmem>>, %arg13: memref<128x4xf32, #tpu.memory_space<vmem>>, %arg14: memref<4x4xf32, #tpu.memory_space<vmem>>, %arg15: memref<1x4xf32, #tpu.memory_space<vmem>>, %arg16: memref<1x256x4xf32, #tpu.memory_space<vmem>>, %arg17: memref<1x256x128xf32, #tpu.memory_space<vmem>>) attributes {dimension_semantics = [#tpu.dimension_semantics<parallel>, #tpu.dimension_semantics<parallel>], iteration_bounds = array<i64: 2, 1>, scalar_prefetch = 0 : i64, scratch_operands = 0 : i64, tpu.core_type = #tpu.core_type<tc>, window_params = [{transform_indices = @transform_0, window_bounds = array<i64: 1, 256, 4>}, {transform_indices = @transform_1, window_bounds = array<i64: 1, 256, 4>}, {transform_indices = @transform_2, window_bounds = array<i64: 1, 1, 4>}, {transform_indices = @transform_3, window_bounds = array<i64: 1, 1, 128>}, {transform_indices = @transform_4, window_bounds = array<i64: 1, 256, 128>}, {pipeline_mode = #tpu.pipeline_mode<synchronous>, transform_indices = @transform_5, window_bounds = array<i64: 4, 128>}, {pipeline_mode = #tpu.pipeline_mode<synchronous>, transform_indices = @transform_6, window_bounds = array<i64: 4, 128>}, {pipeline_mode = #tpu.pipeline_mode<synchronous>, transform_indices = @transform_7, window_bounds = array<i64: 1, 128>}, {transform_indices = @transform_8, window_bounds = array<i64: 1, 128, 128>}, {pipeline_mode = #tpu.pipeline_mode<synchronous>, transform_indices = @transform_9, window_bounds = array<i64: 128, 128>}, {pipeline_mode = #tpu.pipeline_mode<synchronous>, transform_indices = @transform_10, window_bounds = array<i64: 1, 128>}, {pipeline_mode = #tpu.pipeline_mode<synchronous>, transform_indices = @transform_11, window_bounds = array<i64: 128, 4>}, {pipeline_mode = #tpu.pipeline_mode<synchronous>, transform_indices = @transform_12, window_bounds = array<i64: 4, 4>}, {pipeline_mode = #tpu.pipeline_mode<synchronous>, transform_indices = @transform_13, window_bounds = array<i64: 1, 4>}, {transform_indices = @transform_14, window_bounds = array<i64: 1, 256, 4>}, {transform_indices = @transform_15, window_bounds = array<i64: 1, 256, 128>}]} {
    %c0 = arith.constant 0 : index
    %c0_0 = arith.constant 0 : index
    %c0_1 = arith.constant 0 : index
    %0 = vector.load %arg2[%c0, %c0_0, %c0_1] : memref<1x256x4xf32, #tpu.memory_space<vmem>>, vector<1x256x4xf32>
    %1 = vector.shape_cast %0 : vector<1x256x4xf32> to vector<256x4xf32>
    %c0_2 = arith.constant 0 : index
    %c0_3 = arith.constant 0 : index
    %c0_4 = arith.constant 0 : index
    %2 = vector.load %arg3[%c0_2, %c0_3, %c0_4] : memref<1x256x4xf32, #tpu.memory_space<vmem>>, vector<1x256x4xf32>
    %3 = vector.shape_cast %2 : vector<1x256x4xf32> to vector<256x4xf32>
    %c0_5 = arith.constant 0 : index
    %c0_6 = arith.constant 0 : index
    %c0_7 = arith.constant 0 : index
    %4 = vector.load %arg4[%c0_5, %c0_6, %c0_7] : memref<1x1x4xf32, #tpu.memory_space<vmem>>, vector<1x1x4xf32>
    %5 = vector.shape_cast %4 : vector<1x1x4xf32> to vector<1x4xf32>
    %c0_8 = arith.constant 0 : index
    %c0_9 = arith.constant 0 : index
    %c0_10 = arith.constant 0 : index
    %6 = vector.load %arg5[%c0_8, %c0_9, %c0_10] : memref<1x1x128xf32, #tpu.memory_space<vmem>>, vector<1x1x128xf32>
    %7 = vector.shape_cast %6 : vector<1x1x128xf32> to vector<1x128xf32>
    %c0_11 = arith.constant 0 : index
    %c0_12 = arith.constant 0 : index
    %c0_13 = arith.constant 0 : index
    %8 = vector.load %arg10[%c0_11, %c0_12, %c0_13] : memref<1x128x128xf32, #tpu.memory_space<vmem>>, vector<1x128x128xf32>
    %9 = vector.shape_cast %8 : vector<1x128x128xf32> to vector<128x128xf32>
    %c0_14 = arith.constant 0 : index
    %c0_15 = arith.constant 0 : index
    %10 = vector.load %arg12[%c0_14, %c0_15] : memref<1x128xf32, #tpu.memory_space<vmem>>, vector<1x128xf32>
    %c0_16 = arith.constant 0 : index
    %c0_17 = arith.constant 0 : index
    %11 = vector.load %arg7[%c0_16, %c0_17] : memref<4x128xf32, #tpu.memory_space<vmem>>, vector<4x128xf32>
    %cst = arith.constant dense<0.000000e+00> : vector<256x128xf32>
    %12 = tpu.matmul %1, %11, %cst {dimension_numbers = #tpu.dot_dimension_numbers<[1], [0], [0], [1], [0, 0, 1, 1], [], []>} : vector<256x4xf32>, vector<4x128xf32>, vector<256x128xf32> -> vector<256x128xf32>
    %c0_18 = arith.constant 0 : index
    %c0_19 = arith.constant 0 : index
    %13 = vector.load %arg8[%c0_18, %c0_19] : memref<4x128xf32, #tpu.memory_space<vmem>>, vector<4x128xf32>
    %cst_20 = arith.constant dense<0.000000e+00> : vector<256x128xf32>
    %14 = tpu.matmul %3, %13, %cst_20 {dimension_numbers = #tpu.dot_dimension_numbers<[1], [0], [0], [1], [0, 0, 1, 1], [], []>} : vector<256x4xf32>, vector<4x128xf32>, vector<256x128xf32> -> vector<256x128xf32>
    %15 = arith.addf %12, %14 : vector<256x128xf32>
    %c0_21 = arith.constant 0 : index
    %c0_22 = arith.constant 0 : index
    %16 = vector.load %arg9[%c0_21, %c0_22] : memref<1x128xf32, #tpu.memory_space<vmem>>, vector<1x128xf32>
    %17 = vector.broadcast %16 : vector<1x128xf32> to vector<256x128xf32>
    %18 = arith.addf %15, %17 : vector<256x128xf32>
    %cst_23 = arith.constant 0.000000e+00 : f32
    %19 = vector.broadcast %cst_23 : f32 to vector<256x128xf32>
    %20 = arith.maximumf %18, %19 : vector<256x128xf32>
    %21 = vector.broadcast %7 : vector<1x128xf32> to vector<256x128xf32>
    %22 = arith.mulf %20, %21 : vector<256x128xf32>
    %cst_24 = arith.constant dense<0.000000e+00> : vector<256x128xf32>
    %23 = tpu.matmul %22, %9, %cst_24 {dimension_numbers = #tpu.dot_dimension_numbers<[1], [0], [0], [1], [0, 0, 1, 1], [], []>} : vector<256x128xf32>, vector<128x128xf32>, vector<256x128xf32> -> vector<256x128xf32>
    %24 = vector.broadcast %10 : vector<1x128xf32> to vector<256x128xf32>
    %25 = arith.addf %23, %24 : vector<256x128xf32>
    %c0_25 = arith.constant 0 : index
    %c0_26 = arith.constant 0 : index
    %c0_27 = arith.constant 0 : index
    %26 = vector.load %arg6[%c0_25, %c0_26, %c0_27] : memref<1x256x128xf32, #tpu.memory_space<vmem>>, vector<1x256x128xf32>
    %27 = vector.shape_cast %26 : vector<1x256x128xf32> to vector<256x128xf32>
    %c0_28 = arith.constant 0 : index
    %c0_29 = arith.constant 0 : index
    %28 = vector.load %arg11[%c0_28, %c0_29] : memref<128x128xf32, #tpu.memory_space<vmem>>, vector<128x128xf32>
    %cst_30 = arith.constant dense<0.000000e+00> : vector<256x128xf32>
    %29 = tpu.matmul %27, %28, %cst_30 {dimension_numbers = #tpu.dot_dimension_numbers<[1], [0], [0], [1], [0, 0, 1, 1], [], []>} : vector<256x128xf32>, vector<128x128xf32>, vector<256x128xf32> -> vector<256x128xf32>
    %30 = arith.addf %25, %29 : vector<256x128xf32>
    %cst_31 = arith.constant 0.000000e+00 : f32
    %31 = vector.broadcast %cst_31 : f32 to vector<256x128xf32>
    %32 = arith.maximumf %30, %31 : vector<256x128xf32>
    %33 = vector.broadcast %7 : vector<1x128xf32> to vector<256x128xf32>
    %34 = arith.mulf %32, %33 : vector<256x128xf32>
    %cst_32 = arith.constant dense<0.000000e+00> : vector<256x128xf32>
    %35 = tpu.matmul %34, %9, %cst_32 {dimension_numbers = #tpu.dot_dimension_numbers<[1], [0], [0], [1], [0, 0, 1, 1], [], []>} : vector<256x128xf32>, vector<128x128xf32>, vector<256x128xf32> -> vector<256x128xf32>
    %36 = vector.broadcast %10 : vector<1x128xf32> to vector<256x128xf32>
    %37 = arith.addf %35, %36 : vector<256x128xf32>
    %cst_33 = arith.constant 0.000000e+00 : f32
    %38 = vector.broadcast %cst_33 : f32 to vector<256x128xf32>
    %39 = arith.maximumf %37, %38 : vector<256x128xf32>
    %40 = vector.broadcast %7 : vector<1x128xf32> to vector<256x128xf32>
    %41 = arith.mulf %39, %40 : vector<256x128xf32>
    %c0_34 = arith.constant 0 : index
    %c0_35 = arith.constant 0 : index
    %c0_36 = arith.constant 0 : index
    %42 = vector.load %arg17[%c0_34, %c0_35, %c0_36] : memref<1x256x128xf32, #tpu.memory_space<vmem>>, vector<1x256x128xf32>
    %43 = vector.shape_cast %42 : vector<1x256x128xf32> to vector<256x128xf32>
    %44 = vector.shape_cast %41 : vector<256x128xf32> to vector<1x256x128xf32>
    tpu.vector_store %arg17[%c0_34, %c0_35, %c0_36], %44 {strides = array<i32>} : memref<1x256x128xf32, #tpu.memory_space<vmem>>, vector<1x256x128xf32>,
    %c0_37 = arith.constant 0 : index
    %c0_38 = arith.constant 0 : index
    %45 = vector.load %arg13[%c0_37, %c0_38] : memref<128x4xf32, #tpu.memory_space<vmem>>, vector<128x4xf32>
    %cst_39 = arith.constant dense<0.000000e+00> : vector<256x4xf32>
    %46 = tpu.matmul %41, %45, %cst_39 {dimension_numbers = #tpu.dot_dimension_numbers<[1], [0], [0], [1], [0, 0, 1, 1], [], []>} : vector<256x128xf32>, vector<128x4xf32>, vector<256x4xf32> -> vector<256x4xf32>
    %c0_40 = arith.constant 0 : index
    %c0_41 = arith.constant 0 : index
    %47 = vector.load %arg14[%c0_40, %c0_41] : memref<4x4xf32, #tpu.memory_space<vmem>>, vector<4x4xf32>
    %cst_42 = arith.constant dense<0.000000e+00> : vector<256x4xf32>
    %48 = tpu.matmul %1, %47, %cst_42 {dimension_numbers = #tpu.dot_dimension_numbers<[1], [0], [0], [1], [0, 0, 1, 1], [], []>} : vector<256x4xf32>, vector<4x4xf32>, vector<256x4xf32> -> vector<256x4xf32>
    %49 = arith.addf %46, %48 : vector<256x4xf32>
    %c0_43 = arith.constant 0 : index
    %c0_44 = arith.constant 0 : index
    %50 = vector.load %arg15[%c0_43, %c0_44] : memref<1x4xf32, #tpu.memory_space<vmem>>, vector<1x4xf32>
    %51 = vector.broadcast %50 : vector<1x4xf32> to vector<256x4xf32>
    %52 = arith.addf %49, %51 : vector<256x4xf32>
    %53 = arith.negf %52 : vector<256x4xf32>
    %54 = math.exp %53 : vector<256x4xf32>
    %cst_45 = arith.constant 1.000000e+00 : f32
    %55 = vector.broadcast %cst_45 : f32 to vector<256x4xf32>
    %56 = arith.addf %55, %54 : vector<256x4xf32>
    %57 = arith.divf %55, %56 : vector<256x4xf32>
    %58 = vector.broadcast %5 : vector<1x4xf32> to vector<256x4xf32>
    %59 = arith.mulf %57, %58 : vector<256x4xf32>
    %c0_46 = arith.constant 0 : index
    %c0_47 = arith.constant 0 : index
    %c0_48 = arith.constant 0 : index
    %60 = vector.load %arg16[%c0_46, %c0_47, %c0_48] : memref<1x256x4xf32, #tpu.memory_space<vmem>>, vector<1x256x4xf32>
    %61 = vector.shape_cast %60 : vector<1x256x4xf32> to vector<256x4xf32>
    %62 = vector.shape_cast %59 : vector<256x4xf32> to vector<1x256x4xf32>
    tpu.vector_store %arg16[%c0_46, %c0_47, %c0_48], %62 {strides = array<i32>} : memref<1x256x4xf32, #tpu.memory_space<vmem>>, vector<1x256x4xf32>,
    return
  }
  func.func @transform_0(%arg0: i32, %arg1: i32) -> (i32, i32, i32) {
    %c0_i32 = arith.constant 0 : i32
    %c0_i32_0 = arith.constant 0 : i32
    return %arg0, %arg1, %c0_i32 : i32, i32, i32
  }
  func.func @transform_1(%arg0: i32, %arg1: i32) -> (i32, i32, i32) {
    %c0_i32 = arith.constant 0 : i32
    %c0_i32_0 = arith.constant 0 : i32
    return %arg0, %arg1, %c0_i32 : i32, i32, i32
  }
  func.func @transform_2(%arg0: i32, %arg1: i32) -> (i32, i32, i32) {
    %c0_i32 = arith.constant 0 : i32
    %c0_i32_0 = arith.constant 0 : i32
    %c0_i32_1 = arith.constant 0 : i32
    return %arg0, %c0_i32, %c0_i32_0 : i32, i32, i32
  }
  func.func @transform_3(%arg0: i32, %arg1: i32) -> (i32, i32, i32) {
    %c0_i32 = arith.constant 0 : i32
    %c0_i32_0 = arith.constant 0 : i32
    %c0_i32_1 = arith.constant 0 : i32
    return %arg0, %c0_i32, %c0_i32_0 : i32, i32, i32
  }
  func.func @transform_4(%arg0: i32, %arg1: i32) -> (i32, i32, i32) {
    %c0_i32 = arith.constant 0 : i32
    %c0_i32_0 = arith.constant 0 : i32
    return %arg0, %arg1, %c0_i32 : i32, i32, i32
  }
  func.func @transform_5(%arg0: i32, %arg1: i32) -> (i32, i32) {
    %c0_i32 = arith.constant 0 : i32
    %c0_i32_0 = arith.constant 0 : i32
    %c0_i32_1 = arith.constant 0 : i32
    return %c0_i32, %c0_i32_0 : i32, i32
  }
  func.func @transform_6(%arg0: i32, %arg1: i32) -> (i32, i32) {
    %c0_i32 = arith.constant 0 : i32
    %c0_i32_0 = arith.constant 0 : i32
    %c0_i32_1 = arith.constant 0 : i32
    return %c0_i32, %c0_i32_0 : i32, i32
  }
  func.func @transform_7(%arg0: i32, %arg1: i32) -> (i32, i32) {
    %c0_i32 = arith.constant 0 : i32
    %c0_i32_0 = arith.constant 0 : i32
    %c0_i32_1 = arith.constant 0 : i32
    return %c0_i32, %c0_i32_0 : i32, i32
  }
  func.func @transform_8(%arg0: i32, %arg1: i32) -> (i32, i32, i32) {
    %c0_i32 = arith.constant 0 : i32
    %c0_i32_0 = arith.constant 0 : i32
    %c0_i32_1 = arith.constant 0 : i32
    return %arg0, %c0_i32, %c0_i32_0 : i32, i32, i32
  }
  func.func @transform_9(%arg0: i32, %arg1: i32) -> (i32, i32) {
    %c0_i32 = arith.constant 0 : i32
    %c0_i32_0 = arith.constant 0 : i32
    %c0_i32_1 = arith.constant 0 : i32
    return %c0_i32, %c0_i32_0 : i32, i32
  }
  func.func @transform_10(%arg0: i32, %arg1: i32) -> (i32, i32) {
    %c0_i32 = arith.constant 0 : i32
    %c0_i32_0 = arith.constant 0 : i32
    %c0_i32_1 = arith.constant 0 : i32
    return %c0_i32, %c0_i32_0 : i32, i32
  }
  func.func @transform_11(%arg0: i32, %arg1: i32) -> (i32, i32) {
    %c0_i32 = arith.constant 0 : i32
    %c0_i32_0 = arith.constant 0 : i32
    %c0_i32_1 = arith.constant 0 : i32
    return %c0_i32, %c0_i32_0 : i32, i32
  }
  func.func @transform_12(%arg0: i32, %arg1: i32) -> (i32, i32) {
    %c0_i32 = arith.constant 0 : i32
    %c0_i32_0 = arith.constant 0 : i32
    %c0_i32_1 = arith.constant 0 : i32
    return %c0_i32, %c0_i32_0 : i32, i32
  }
  func.func @transform_13(%arg0: i32, %arg1: i32) -> (i32, i32) {
    %c0_i32 = arith.constant 0 : i32
    %c0_i32_0 = arith.constant 0 : i32
    %c0_i32_1 = arith.constant 0 : i32
    return %c0_i32, %c0_i32_0 : i32, i32
  }
  func.func @transform_14(%arg0: i32, %arg1: i32) -> (i32, i32, i32) {
    %c0_i32 = arith.constant 0 : i32
    %c0_i32_0 = arith.constant 0 : i32
    return %arg0, %arg1, %c0_i32 : i32, i32, i32
  }
  func.func @transform_15(%arg0: i32, %arg1: i32) -> (i32, i32, i32) {
    %c0_i32 = arith.constant 0 : i32
    %c0_i32_0 = arith.constant 0 : i32
    return %arg0, %arg1, %c0_i32 : i32, i32, i32
  }
}

</mosaic_0001>

<bundles_post_ra>
// kernel: tpu_custom_call.1
= control target key start
LH: loop header
LB: loop body
LE: loop exit
PB: predicated region body
PF: predicated region fallthrough
CT: control target
= control target key end

     0   :  { %s6096_s0 = inlined_call_operand.vmem [shape: f32[2,256,4], index: 0, kind: input, shape index: {}]   ;;  %s6097_s1 = inlined_call_operand.vmem [shape: f32[2,256,4], index: 1, kind: input, shape index: {}]   ;;  %s6098_s2 = inlined_call_operand.vmem [shape: f32[2,1,4], index: 2, kind: input, shape index: {}]   ;;  %s6099_s3 = inlined_call_operand.vmem [shape: f32[2,1,128], index: 3, kind: input, shape index: {}]   ;;  %s6100_s4 = inlined_call_operand.vmem [shape: f32[2,256,128], index: 4, kind: input, shape index: {}]   ;;  %s6101_s5 = inlined_call_operand.vmem [shape: f32[4,128], index: 5, kind: input, shape index: {}]   ;;  %s6102_s6 = inlined_call_operand.vmem [shape: f32[4,128], index: 6, kind: input, shape index: {}]   ;;  %s6103_s7 = inlined_call_operand.vmem [shape: f32[1,128], index: 7, kind: input, shape index: {}]   ;;  %s6104_s8 = inlined_call_operand.vmem [shape: f32[2,128,128], index: 8, kind: input, shape index: {}]   ;;  %s6105_s9 = inlined_call_operand.vmem [shape: f32[128,128], index: 9, kind: input, shape index: {}]   ;;  %s6106_s10 = inlined_call_operand.vmem [shape: f32[1,128], index: 10, kind: input, shape index: {}]   ;;  %s6107_s11 = inlined_call_operand.vmem [shape: f32[128,4], index: 11, kind: input, shape index: {}]   ;;  %s6108_s12 = inlined_call_operand.vmem [shape: f32[4,4], index: 12, kind: input, shape index: {}]   ;;  %s6109_s13 = inlined_call_operand.vmem [shape: f32[1,4], index: 13, kind: input, shape index: {}]   ;;  %s6110_s14 = inlined_call_operand.vmem [shape: f32[2,256,4], index: 14, kind: output, shape index: {0}]   ;;  %s6111_s15 = inlined_call_operand.hbm [shape: f32[2,256,128], index: 15, kind: output, shape index: {1}]  }
   0x1   :  { %6114 = sst [smem:[#allocation7_spill]] %s6096_s0 }
   0x2   :  { %6115 = sst [smem:[#allocation8_spill]] %s6097_s1 }
   0x3   :  { %6116 = sst [smem:[#allocation9_spill]] %s6099_s3 }
   0x4   :  { %6117 = sst [smem:[#allocation10_spill]] %s6100_s4 }
   0x5   :  { %6118 = sst [smem:[#allocation11_spill]] %s6101_s5 }
   0x6   :  { %6119 = sst [smem:[#allocation12_spill]] %s6102_s6 }
   0x7   :  { %21 = vsyncpa [#allocation3], 0 }
   0x8   :  { %23 = vsyncpa [#allocation3 + $0x1], 0  ;;  %s4960_s18 = smov 0   ;;  %s4962_s19 = smov 0  }
   0x9   :  { %s4964_s20 = smov 0   ;;  %s4966_s21 = smov 0  }
   0xa   :  { %s4968_s22 = smov 0   ;;  %s4970_s23 = smov 0  }
   0xb LB: > { %6120 = sst [smem:[#allocation5_spill]] %s4871_s22  ;;  %s3415_s24 = sadd.s32 4294967295, %s4875_s23   ;;  %s4875_s23 = sphi %s4970_s23, %s29_s23   ;;  %s4871_s22 = sphi %s4968_s22, %s6131_s22   ;;  %s4867_s21 = sphi %s4966_s21, %s6130_s21   ;;  %s4863_s20 = sphi %s4964_s20, %s6134_s20   ;;  %s4859_s19 = sphi %s4962_s19, %s6133_s19   ;;  %s4855_s18 = sphi %s4960_s18, %s6132_s18  }
   0xc   : > { %s3416_s25 = sadd.s32 4294967294, %s4875_s23   ;;  %s41_s26 = sadd.s32 1, %s4871_s22 }
   0xd   : > { %s408_s27 = sadd.s32 1, %s4863_s20  ;;  %p43_p0 = scmp.ge.s32.totalorder %s41_s26, 2 }
   0xe   : > { %p418_p1 = scmp.ne.s32.totalorder %s4863_s20, %s4859_s19  ;;  %p419_p2 = scmp.eq.s32.totalorder %s3415_s24, 1 }
   0xf   : > { %p424_p3 = scmp.ne.s32.totalorder %s4859_s19, %s4855_s18  ;;  %s6136_s26 = smov (%p43_p0, %s41_s26), 0 }
  0x10   : > { %6121 = sst [smem:[#allocation6_spill]] %s6136_s26  ;;  %p5000_p4 = por %p419_p2, %p418_p1 }
  0x11   : > { %p425_p5 = scmp.eq.s32.totalorder %s3416_s25, 1  ;;  %s403_s29 = ssub.s32 %s4871_s22, %s6136_s26 }
  0x12   : > { %p3419_p6 = scmp.ge.s32.totalorder %s4875_s23, 1  ;;  %p406_p7 = scmp.eq.s32.totalorder %s403_s29, 0 }
  0x13   : > { %p5007_p8 = por %p425_p5, %p424_p3  ;;  %p526_p9 = scmp.lt.s32.totalorder %s4875_s23, 3 }
  0x14   : > { %s5013_s16 = scalar_select %p406_p7, %s4863_s20, %s408_s27  }
  0x15   : > { %p527_p10 = pnand %p3419_p6, %p526_p9 }
  0x16   : > { %s6124_s6 = sld [smem:[#allocation12_spill]] (!%p527_p10)  ;;  %vm850_vm0 = vcmask (!%p527_p10), 1043456   ;;  %p617_p11 = scmp.lt.s32.totalorder (!%p527_p10), %s4867_s21, 1  ;;  %vm753_vm1 = vcmask (!%p527_p10), 31744   ;;  %v1775_v2 = vld [vmem:[%s6105_s9] sm:$0xff] (!%p527_p10)  ;;  %v1776_v3 = vld [vmem:[%s6105_s9 + $0x8] sm:$0xff] (!%p527_p10) }
  0x17   : > { %530 = sbr.rel (%p527_p10) target bundleno = 1086 (0x43e), region = 76  ;;  %s6125_s5 = sld [smem:[#allocation11_spill]] (!%p527_p10)  ;;  %v5046_v7 = vpack.c.bf16 (!%p527_p10), %v1776_v3, %v1775_v2  ;;  %v1777_v56 = vld [vmem:[%s6105_s9 + $0x10] sm:$0xff] (!%p527_p10)  ;;  %v1778_v57 = vld [vmem:[%s6105_s9 + $0x18] sm:$0xff] (!%p527_p10)  ;;  %v1779_v61 = vld [vmem:[%s6105_s9 + $0x20] sm:$0xff] (!%p527_p10) }
  0x18   : > { %s6126_s1 = sld [smem:[#allocation8_spill]] (!%p527_p10)  ;;  %s6127_s0 = sld [smem:[#allocation7_spill]] (!%p527_p10)  ;;  %v5176_v60 = vpack.c.bf16 (!%p527_p10), %v1778_v57, %v1777_v56  ;;  %v1780_v62 = vld [vmem:[%s6105_s9 + $0x28] sm:$0xff] (!%p527_p10)  ;;  %v1781_v2 = vld [vmem:[%s6105_s9 + $0x30] sm:$0xff] (!%p527_p10)  ;;  %v1782_v3 = vld [vmem:[%s6105_s9 + $0x38] sm:$0xff] (!%p527_p10) }
  0x19   : > { %v1790_v56 = vld [vmem:[%s6105_s9 + $0x78] sm:$0xff] (!%p527_p10)  ;;  %s6128_s4 = sld [smem:[#allocation10_spill]] (!%p527_p10)  ;;  %s6129_s3 = sld [smem:[#allocation9_spill]] (!%p527_p10) }
  0x1c   : > { %v752_v0 = vld [vmem:[%s6124_s6] sm:$0xf] (!%p527_p10) }
  0x1d   : > { %3869 = vmatprep.subr.msk.mxu0 (!%p527_p10), %vm850_vm0, %v752_v0  ;;  %v751_v1 = vld [vmem:[%s6125_s5] sm:$0xf] (!%p527_p10) }
  0x1e   : > { %3870 = vmatpush3.msk.msra.mxu0 %vm850_vm0, %v752_v0  ;;  %s5025_s27 = scalar_select %p617_p11, %s4867_s21, 1 }
  0x1f   : > { %3919 = vmatprep.subr.msk.mxu0 %vm850_vm0, %v751_v1 }
  0x20   : > { %s5029_s26 = sshll.u32 %s5025_s27, 8  ;;  %s3575_s6 = sshll.u32 %s5025_s27, 7 }
  0x21   : > { %s5041_s5 = scalar_lea.vmem %s6126_s1, %s5029_s26  ;;  %s5072_s24 = scalar_lea.vmem %s6104_s8, %s3575_s6 }
  0x22   : > { %v700_v4 = vld [vmem:[%s5041_s5] sm:$0xff]  ;;  %v701_v5 = vld [vmem:[%s5041_s5 + $0x8] sm:$0xff]  ;;  %v702_v6 = vld [vmem:[%s5041_s5 + $0x10] sm:$0xff]  ;;  %s5153_s6 = scalar_lea.vmem %s6127_s0, %s5029_s26  ;;  %s5444_s17 = scalar_lea.vmem %s6129_s3, %s5025_s27 }
  0x23   : > { %3871 = vmatprep.mubr.msk.f32.mxu0 %vm753_vm1, %v700_v4  ;;  %v703_v8 = vld [vmem:[%s5041_s5 + $0x18] sm:$0xff]  ;;  %v704_v9 = vld [vmem:[%s5041_s5 + $0x20] sm:$0xff]  ;;  %v705_v10 = vld [vmem:[%s5041_s5 + $0x28] sm:$0xff] }
  0x24   : > { %3872 = vmatmul.mubr.msk.f32.vlgmr.msra.gmra.mrb[0].mxu0 %vm753_vm1, %v701_v5  ;;  %v706_v11 = vld [vmem:[%s5041_s5 + $0x30] sm:$0xff]  ;;  %v707_v12 = vld [vmem:[%s5041_s5 + $0x38] sm:$0xff]  ;;  %v708_v13 = vld [vmem:[%s5041_s5 + $0x40] sm:$0xff] }
  0x25   : > { %3920 = vmatpush3.msk.msra.mxu0 %vm850_vm0, %v751_v1  ;;  %3874 = vmatprep.mubr.msk.f32.mxu0 %vm753_vm1, %v702_v6  ;;  %v709_v14 = vld [vmem:[%s5041_s5 + $0x48] sm:$0xff]  ;;  %v710_v15 = vld [vmem:[%s5041_s5 + $0x50] sm:$0xff]  ;;  %v711_v16 = vld [vmem:[%s5041_s5 + $0x58] sm:$0xff]  ;;  %v5196_v1 = vpack.c.bf16 %v1780_v62, %v1779_v61  ;;  %v5216_v6 = vpack.c.bf16 %v1782_v3, %v1781_v2 }
  0x26   : > { %4372 = vmatprep.subr.bf16.mxu0 %v5046_v7  ;;  %v712_v17 = vld [vmem:[%s5041_s5 + $0x60] sm:$0xff]  ;;  %v735_v19 = vld [vmem:[%s5072_s24 + $0x8] sm:$0xff]  ;;  %v736_v21 = vld [vmem:[%s5072_s24 + $0x10] sm:$0xff] }
  0x27   : > { %v734_v18 = vld [vmem:[%s5072_s24] sm:$0xff]  ;;  %v737_v22 = vld [vmem:[%s5072_s24 + $0x18] sm:$0xff]  ;;  %v713_v23 = vld [vmem:[%s5041_s5 + $0x68] sm:$0xff] }
  0x28   : > { %3875 = vmatmul.mubr.msk.f32.gmra.mrb[2].mxu0 %vm753_vm1, %v703_v8  ;;  %v5080_v20 = vpack.c.bf16 %v735_v19, %v734_v18  ;;  %v5086_v24 = vpack.c.bf16 %v737_v22, %v736_v21  ;;  %v738_v25 = vld [vmem:[%s5072_s24 + $0x20] sm:$0xff]  ;;  %v739_v26 = vld [vmem:[%s5072_s24 + $0x28] sm:$0xff]  ;;  %v714_v27 = vld [vmem:[%s5041_s5 + $0x70] sm:$0xff] }
  0x29   : > { %3877 = vmatprep.mubr.msk.f32.mxu0 %vm753_vm1, %v704_v9  ;;  %v5095_v28 = vpack.c.bf16 %v739_v26, %v738_v25  ;;  %v715_v29 = vld [vmem:[%s5041_s5 + $0x78] sm:$0xff]  ;;  %v740_v30 = vld [vmem:[%s5072_s24 + $0x30] sm:$0xff]  ;;  %v716_v32 = vld [vmem:[%s5041_s5 + $0x80] sm:$0xff] }
  0x2a   : > { %4340 = vmatprep.subr.bf16.mxu1 %v5080_v20  ;;  %v741_v31 = vld [vmem:[%s5072_s24 + $0x38] sm:$0xff]  ;;  %v717_v34 = vld [vmem:[%s5041_s5 + $0x88] sm:$0xff]  ;;  %v742_v35 = vld [vmem:[%s5072_s24 + $0x40] sm:$0xff] }
  0x2b   : > { %4342 = vmatpush3.bf16.msra.mxu1 %v5080_v20  ;;  %v5105_v33 = vpack.c.bf16 %v741_v31, %v740_v30  ;;  %v743_v36 = vld [vmem:[%s5072_s24 + $0x48] sm:$0xff]  ;;  %v718_v37 = vld [vmem:[%s5041_s5 + $0x90] sm:$0xff]  ;;  %v719_v39 = vld [vmem:[%s5041_s5 + $0x98] sm:$0xff] }
  0x2c   : > { %3878 = vmatmul.mubr.msk.f32.gmra.mrb[4].mxu0 %vm753_vm1, %v705_v10  ;;  %4344 = vmatprep.subr.bf16.mxu1 %v5086_v24  ;;  %v5115_v38 = vpack.c.bf16 %v743_v36, %v742_v35  ;;  %v744_v40 = vld [vmem:[%s5072_s24 + $0x50] sm:$0xff]  ;;  %v745_v41 = vld [vmem:[%s5072_s24 + $0x58] sm:$0xff]  ;;  %v720_v42 = vld [vmem:[%s5041_s5 + $0xa0] sm:$0xff] }
  0x2d   : > { %3880 = vmatprep.mubr.msk.f32.mxu0 %vm753_vm1, %v706_v11  ;;  %v5125_v43 = vpack.c.bf16 %v745_v41, %v744_v40  ;;  %v721_v44 = vld [vmem:[%s5041_s5 + $0xa8] sm:$0xff]  ;;  %v722_v45 = vld [vmem:[%s5041_s5 + $0xb0] sm:$0xff]  ;;  %v723_v46 = vld [vmem:[%s5041_s5 + $0xb8] sm:$0xff] }
  0x2e   : > { %v724_v47 = vld [vmem:[%s5041_s5 + $0xc0] sm:$0xff]  ;;  %v725_v48 = vld [vmem:[%s5041_s5 + $0xc8] sm:$0xff]  ;;  %v726_v49 = vld [vmem:[%s5041_s5 + $0xd0] sm:$0xff] }
  0x2f   : > { %4346 = vmatpush3.bf16.msra.mxu1 %v5086_v24  ;;  %v727_v50 = vld [vmem:[%s5041_s5 + $0xd8] sm:$0xff]  ;;  %v728_v51 = vld [vmem:[%s5041_s5 + $0xe0] sm:$0xff]  ;;  %v729_v52 = vld [vmem:[%s5041_s5 + $0xe8] sm:$0xff] }
  0x30   : > { %3881 = vmatmul.mubr.msk.f32.gmra.mrb[6].mxu0 %vm753_vm1, %v707_v12  ;;  %4348 = vmatprep.subr.bf16.mxu1 %v5095_v28  ;;  %v730_v53 = vld [vmem:[%s5041_s5 + $0xf0] sm:$0xff]  ;;  %v731_v54 = vld [vmem:[%s5041_s5 + $0xf8] sm:$0xff]  ;;  %v5159_v55 = vld [vmem:[%s5153_s6] sm:$0xff]  ;;  %s5399_s5 = scalar_lea.vmem %s6128_s4, %s5029_s26  ;;  %s613_s4 = sand.u32 1, %s4859_s19  }
  0x31   : > { %3883 = vmatprep.mubr.msk.f32.mxu0 %vm753_vm1, %v708_v13  ;;  %v5171_v58 = vld [vmem:[%s5153_s6 + $0x8] sm:$0xff]  ;;  %v5174_v59 = vld [vmem:[%s5153_s6 + $0x10] sm:$0xff]  ;;  %v5189_v63 = vld [vmem:[%s5153_s6 + $0x18] sm:$0xff]  ;;  %s5905_s29 = scalar_lea.sflag [#allocation3], %s613_s4 }
  0x32   : > { %v5193_v0 = vld [vmem:[%s5153_s6 + $0x20] sm:$0xff]  ;;  %v5209_v4 = vld [vmem:[%s5153_s6 + $0x28] sm:$0xff]  ;;  %v5213_v5 = vld [vmem:[%s5153_s6 + $0x30] sm:$0xff] }
  0x33   : > { %4350 = vmatpush3.bf16.msra.mxu1 %v5095_v28  ;;  %v1783_v8 = vld [vmem:[%s6105_s9 + $0x40] sm:$0xff]  ;;  %v1784_v9 = vld [vmem:[%s6105_s9 + $0x48] sm:$0xff]  ;;  %v5229_v10 = vld [vmem:[%s5153_s6 + $0x38] sm:$0xff] }
  0x34   : > { %3884 = vmatmul.mubr.msk.f32.gmra.mrb[8].mxu0 %vm753_vm1, %v709_v14  ;;  %4352 = vmatprep.subr.bf16.mxu1 %v5105_v33  ;;  %v5233_v11 = vld [vmem:[%s5153_s6 + $0x40] sm:$0xff]  ;;  %v5236_v12 = vpack.c.bf16 %v1784_v9, %v1783_v8  ;;  %v1785_v13 = vld [vmem:[%s6105_s9 + $0x50] sm:$0xff]  ;;  %v1786_v14 = vld [vmem:[%s6105_s9 + $0x58] sm:$0xff] }
  0x35   : > { %3886 = vmatprep.mubr.msk.f32.mxu0 %vm753_vm1, %v710_v15  ;;  %v5249_v15 = vld [vmem:[%s5153_s6 + $0x48] sm:$0xff]  ;;  %v5263_v18 = vld [vmem:[%s5153_s6 + $0x58] sm:$0xff]  ;;  %v5267_v19 = vld [vmem:[%s5153_s6 + $0x60] sm:$0xff] }
  0x36   : > { %v5275_v21 = vld [vmem:[%s5153_s6 + $0x68] sm:$0xff]  ;;  %v5279_v22 = vld [vmem:[%s5153_s6 + $0x70] sm:$0xff]  ;;  %v5289_v25 = vld [vmem:[%s5153_s6 + $0x80] sm:$0xff] }
  0x37   : > { %4354 = vmatpush3.bf16.msra.mxu1 %v5105_v33  ;;  %v5296_v26 = vld [vmem:[%s5153_s6 + $0x88] sm:$0xff]  ;;  %v5309_v30 = vld [vmem:[%s5153_s6 + $0xa0] sm:$0xff]  ;;  %v1745_v2 = vld [vmem:[%s5399_s5 + $0x10] sm:$0xff] }
  0x38   : > { %3887 = vmatmul.mubr.msk.f32.gmra.mrb[10].mxu0 %vm753_vm1, %v711_v16  ;;  %4356 = vmatprep.subr.bf16.mxu1 %v5115_v38  ;;  %v5253_v16 = vld [vmem:[%s5153_s6 + $0x50] sm:$0xff]  ;;  %v5316_v31 = vld [vmem:[%s5153_s6 + $0xa8] sm:$0xff]  ;;  %v5329_v35 = vld [vmem:[%s5153_s6 + $0xc0] sm:$0xff] }
  0x39   : > { %3889 = vmatprep.mubr.msk.f32.mxu0 %vm753_vm1, %v712_v17  ;;  %v5256_v17 = vpack.c.bf16 %v1786_v14, %v1785_v13  ;;  %v5336_v36 = vld [vmem:[%s5153_s6 + $0xc8] sm:$0xff]  ;;  %v5349_v40 = vld [vmem:[%s5153_s6 + $0xe0] sm:$0xff]  ;;  %v1746_v3 = vld [vmem:[%s5399_s5 + $0x18] sm:$0xff] }
  0x3a   : > { %v5356_v41 = vld [vmem:[%s5153_s6 + $0xe8] sm:$0xff]  ;;  %v1743_v61 = vld [vmem:[%s5399_s5] sm:$0xff]  ;;  %v1750_v13 = vld [vmem:[%s5399_s5 + $0x38] sm:$0xff] }
  0x3b   : > { %4358 = vmatpush3.bf16.msra.mxu1 %v5115_v38  ;;  %v1744_v62 = vld [vmem:[%s5399_s5 + $0x8] sm:$0xff]  ;;  %v1747_v8 = vld [vmem:[%s5399_s5 + $0x20] sm:$0xff] }
  0x3c   : > { %3890 = vmatmul.mubr.msk.f32.gmra.mrb[12].mxu0 %vm753_vm1, %v713_v23  ;;  %4360 = vmatprep.subr.bf16.mxu1 %v5125_v43  ;;  %v5286_v23 = vld [vmem:[%s5153_s6 + $0x78] sm:$0xff]  ;;  %v1748_v9 = vld [vmem:[%s5399_s5 + $0x28] sm:$0xff] }
  0x3d   : > { %3892 = vmatprep.mubr.msk.f32.mxu0 %vm753_vm1, %v714_v27  ;;  %v5299_v27 = vld [vmem:[%s5153_s6 + $0x90] sm:$0xff]  ;;  %v1752_v14 = vld [vmem:[%s5399_s5 + $0x48] sm:$0xff] }
  0x3f   : > { %4362 = vmatpush3.bf16.msra.mxu1 %v5125_v43 }
  0x40   : > { %3893 = vmatmul.mubr.msk.f32.gmra.mrb[14].mxu0 %vm753_vm1, %v715_v29  ;;  %v5306_v29 = vld [vmem:[%s5153_s6 + $0x98] sm:$0xff] }
  0x41   : > { %3895 = vmatprep.mubr.msk.f32.mxu0 %vm753_vm1, %v716_v32  ;;  %v5319_v32 = vld [vmem:[%s5153_s6 + $0xb0] sm:$0xff] }
  0x44   : > { %3896 = vmatmul.mubr.msk.f32.gmra.mrb[16].mxu0 %vm753_vm1, %v717_v34  ;;  %v5326_v34 = vld [vmem:[%s5153_s6 + $0xb8] sm:$0xff] }
  0x45   : > { %3898 = vmatprep.mubr.msk.f32.mxu0 %vm753_vm1, %v718_v37  ;;  %v5339_v37 = vld [vmem:[%s5153_s6 + $0xd0] sm:$0xff] }
  0x48   : > { %3899 = vmatmul.mubr.msk.f32.gmra.mrb[18].mxu0 %vm753_vm1, %v719_v39  ;;  %v5346_v39 = vld [vmem:[%s5153_s6 + $0xd8] sm:$0xff] }
  0x49   : > { %3901 = vmatprep.mubr.msk.f32.mxu0 %vm753_vm1, %v720_v42  ;;  %v5359_v42 = vld [vmem:[%s5153_s6 + $0xf0] sm:$0xff] }
  0x4c   : > { %3902 = vmatmul.mubr.msk.f32.gmra.mrb[20].mxu0 %vm753_vm1, %v721_v44  ;;  %v5366_v44 = vld [vmem:[%s5153_s6 + $0xf8] sm:$0xff]  ;;  %s3420_s6 = sshll.u32 %s613_s4, 8 }
  0x4d   : > { %3904 = vmatprep.mubr.msk.f32.mxu0 %vm753_vm1, %v722_v45  ;;  %v746_v45 = vld [vmem:[%s5072_s24 + $0x60] sm:$0xff]  ;;  %s5799_s22 = scalar_lea.vmem [#allocation2], %s3420_s6 }
  0x4e   : > { %s3233_s1 = sshll.u32 %s5799_s22, 4  ;;  %s5901_s1 = int_to_ptr.vmem [resolvable:$true] %s3233_s1 }
  0x4f   : > { %s4797_s0 = scalar_lea.vmem %s5901_s1, 4096 }
  0x50   : > { %3905 = vmatmul.mubr.msk.f32.gmra.mrb[22].mxu0 %vm753_vm1, %v723_v46  ;;  %v747_v46 = vld [vmem:[%s5072_s24 + $0x68] sm:$0xff]  ;;  %p4798_p12 = scmp.ne.s32.totalorder %s5901_s1, %s4797_s0 }
  0x51   : > { %3907 = vmatprep.mubr.msk.f32.mxu0 %vm753_vm1, %v724_v47  ;;  %v4363_v47 = vpack.c.bf16 %v747_v46, %v746_v45  ;;  %v1754_v45 = vld [vmem:[%s5399_s5 + $0x58] sm:$0xff]  ;;  %v1756_v46 = vld [vmem:[%s5399_s5 + $0x68] sm:$0xff] }
  0x52   : > { %p4799_p13 = pnand %p4798_p12, %p5000_p4 }
  0x53   : > { %4364 = vmatprep.subr.bf16.mxu1 %v4363_v47 }
  0x54   : > { %3908 = vmatmul.mubr.msk.f32.gmra.mrb[24].mxu0 %vm753_vm1, %v725_v48  ;;  %v1787_v48 = vld [vmem:[%s6105_s9 + $0x60] sm:$0xff]  ;;  %4366 = vmatpush3.bf16.msra.mxu1 %v4363_v47  ;;  %p4800_p0 = pneg %p4799_p13 }
  0x55   : > { %3910 = vmatprep.mubr.msk.f32.mxu0 %vm753_vm1, %v726_v49  ;;  %v1788_v49 = vld [vmem:[%s6105_s9 + $0x68] sm:$0xff] }
  0x58   : > { %3911 = vmatmul.mubr.msk.f32.gmra.mrb[26].mxu0 %vm753_vm1, %v727_v50  ;;  %v5378_v50 = vpack.c.bf16 %v1788_v49, %v1787_v48  ;;  %v1758_v48 = vld [vmem:[%s5399_s5 + $0x78] sm:$0xff]  ;;  %v1759_v49 = vld [vmem:[%s5399_s5 + $0x80] sm:$0xff] }
  0x59   : > { %3913 = vmatprep.mubr.msk.f32.mxu0 %vm753_vm1, %v728_v51  ;;  %v748_v51 = vld [vmem:[%s5072_s24 + $0x70] sm:$0xff] }
  0x5c   : > { %3914 = vmatmul.mubr.msk.f32.gmra.mrb[28].mxu0 %vm753_vm1, %v729_v52  ;;  %v749_v52 = vld [vmem:[%s5072_s24 + $0x78] sm:$0xff] }
  0x5d   : > { %3916 = vmatprep.mubr.msk.f32.mxu0 %vm753_vm1, %v730_v53  ;;  %v4367_v53 = vpack.c.bf16 %v749_v52, %v748_v51  ;;  %v1761_v51 = vld [vmem:[%s5399_s5 + $0x90] sm:$0xff]  ;;  %v1762_v52 = vld [vmem:[%s5399_s5 + $0x98] sm:$0xff] }
  0x5f   : > { %4368 = vmatprep.subr.bf16.mxu1 %v4367_v53 }
  0x60   : > { %3917 = vmatmul.mubr.msk.f32.gmra.mrb[30].mxu0 %vm753_vm1, %v731_v54  ;;  %v1789_v54 = vld [vmem:[%s6105_s9 + $0x70] sm:$0xff]  ;;  %4370 = vmatpush3.bf16.msra.mxu1 %v4367_v53 }
  0x61   : > { %3921 = vmatprep.mubr.msk.f32.mxu0 %vm753_vm1, %v5159_v55  ;;  %v5390_v57 = vpack.c.bf16 %v1790_v56, %v1789_v54  ;;  %4467 = vmatprep.subr.bf16.mxu1 %v5046_v7  ;;  %v1763_v54 = vld [vmem:[%s5399_s5 + $0xa0] sm:$0xff]  ;;  %v1764_v56 = vld [vmem:[%s5399_s5 + $0xa8] sm:$0xff] }
  0x64   : > { %3922 = vmatmul.mubr.msk.f32.vlgmr.msra.gmra.mrb[0].mxu0 %vm753_vm1, %v5171_v58 }
  0x65   : > { %3924 = vmatprep.mubr.msk.f32.mxu0 %vm753_vm1, %v5174_v59  ;;  %4374 = vmatpush3.bf16.msra.mxu0 %v5046_v7 }
  0x66   : > { %4376 = vmatprep.subr.bf16.mxu0 %v5176_v60 }
  0x68   : > { %3925 = vmatmul.mubr.msk.f32.gmra.mrb[2].mxu0 %vm753_vm1, %v5189_v63 }
  0x69   : > { %3927 = vmatprep.mubr.msk.f32.mxu0 %vm753_vm1, %v5193_v0  ;;  %4378 = vmatpush3.bf16.msra.mxu0 %v5176_v60 }
  0x6a   : > { %4380 = vmatprep.subr.bf16.mxu0 %v5196_v1 }
  0x6c   : > { %3928 = vmatmul.mubr.msk.f32.gmra.mrb[4].mxu0 %vm753_vm1, %v5209_v4 }
  0x6d   : > { %3930 = vmatprep.mubr.msk.f32.mxu0 %vm753_vm1, %v5213_v5  ;;  %4382 = vmatpush3.bf16.msra.mxu0 %v5196_v1 }
  0x6e   : > { %4384 = vmatprep.subr.bf16.mxu0 %v5216_v6 }
  0x70   : > { %3931 = vmatmul.mubr.msk.f32.gmra.mrb[6].mxu0 %vm753_vm1, %v5229_v10 }
  0x71   : > { %3933 = vmatprep.mubr.msk.f32.mxu0 %vm753_vm1, %v5233_v11  ;;  %4386 = vmatpush3.bf16.msra.mxu0 %v5216_v6 }
  0x72   : > { %4388 = vmatprep.subr.bf16.mxu0 %v5236_v12 }
  0x74   : > { %3934 = vmatmul.mubr.msk.f32.gmra.mrb[8].mxu0 %vm753_vm1, %v5249_v15 }
  0x75   : > { %3936 = vmatprep.mubr.msk.f32.mxu0 %vm753_vm1, %v5253_v16  ;;  %4390 = vmatpush3.bf16.msra.mxu0 %v5236_v12 }
  0x76   : > { %4392 = vmatprep.subr.bf16.mxu0 %v5256_v17 }
  0x78   : > { %3937 = vmatmul.mubr.msk.f32.gmra.mrb[10].mxu0 %vm753_vm1, %v5263_v18 }
  0x79   : > { %3939 = vmatprep.mubr.msk.f32.mxu0 %vm753_vm1, %v5267_v19  ;;  %4394 = vmatpush3.bf16.msra.mxu0 %v5256_v17 }
  0x7a   : > { %4396 = vmatprep.subr.bf16.mxu0 %v5378_v50 }
  0x7c   : > { %3940 = vmatmul.mubr.msk.f32.gmra.mrb[12].mxu0 %vm753_vm1, %v5275_v21 }
  0x7d   : > { %3942 = vmatprep.mubr.msk.f32.mxu0 %vm753_vm1, %v5279_v22  ;;  %4398 = vmatpush3.bf16.msra.mxu0 %v5378_v50 }
  0x7e   : > { %4400 = vmatprep.subr.bf16.mxu0 %v5390_v57 }
  0x80   : > { %3943 = vmatmul.mubr.msk.f32.gmra.mrb[14].mxu0 %vm753_vm1, %v5286_v23 }
  0x81   : > { %3945 = vmatprep.mubr.msk.f32.mxu0 %vm753_vm1, %v5289_v25  ;;  %4402 = vmatpush3.bf16.msra.mxu0 %v5390_v57 }
  0x82   : > { %4404 = vmatprep.subr.bf16.mxu0 %v5080_v20 }
  0x84   : > { %3946 = vmatmul.mubr.msk.f32.gmra.mrb[16].mxu0 %vm753_vm1, %v5296_v26 }
  0x85   : > { %3948 = vmatprep.mubr.msk.f32.mxu0 %vm753_vm1, %v5299_v27 }
  0x88   : > { %3949 = vmatmul.mubr.msk.f32.gmra.mrb[18].mxu0 %vm753_vm1, %v5306_v29 }
  0x89   : > { %3951 = vmatprep.mubr.msk.f32.mxu0 %vm753_vm1, %v5309_v30 }
  0x8c   : > { %3952 = vmatmul.mubr.msk.f32.gmra.mrb[20].mxu0 %vm753_vm1, %v5316_v31 }
  0x8d   : > { %3954 = vmatprep.mubr.msk.f32.mxu0 %vm753_vm1, %v5319_v32 }
  0x90   : > { %3955 = vmatmul.mubr.msk.f32.gmra.mrb[22].mxu0 %vm753_vm1, %v5326_v34 }
  0x91   : > { %3957 = vmatprep.mubr.msk.f32.mxu0 %vm753_vm1, %v5329_v35 }
  0x94   : > { %3958 = vmatmul.mubr.msk.f32.gmra.mrb[24].mxu0 %vm753_vm1, %v5336_v36 }
  0x95   : > { %3960 = vmatprep.mubr.msk.f32.mxu0 %vm753_vm1, %v5339_v37 }
  0x98   : > { %3961 = vmatmul.mubr.msk.f32.gmra.mrb[26].mxu0 %vm753_vm1, %v5346_v39 }
  0x99   : > { %3963 = vmatprep.mubr.msk.f32.mxu0 %vm753_vm1, %v5349_v40 }
  0x9c   : > { %3964 = vmatmul.mubr.msk.f32.gmra.mrb[28].mxu0 %vm753_vm1, %v5356_v41 }
  0x9d   : > { %3966 = vmatprep.mubr.msk.f32.mxu0 %vm753_vm1, %v5359_v42 }
  0xa0   : > { %3967 = vmatmul.mubr.msk.f32.gmra.mrb[30].mxu0 %vm753_vm1, %v5366_v44 }
  0xa1   : > { %4081 = vmatprep.mubr.f32.mxu0 %v1743_v61 }
  0xa4   : > { %4082 = vmatmul.mubr.f32.vlgmr.msra.gmra.mrb[32].mxu0 %v1744_v62 }
  0xa5   : > { %4406 = vmatpush3.bf16.msra.mxu0 %v5080_v20  ;;  %4084 = vmatprep.mubr.f32.mxu0 %v1745_v2  ;;  %v1749_v20 = vld [vmem:[%s5399_s5 + $0x30] sm:$0xff] }
  0xa6   : > { %4408 = vmatprep.subr.bf16.mxu0 %v5086_v24 }
  0xa8   : > { %4085 = vmatmul.mubr.f32.gmra.mrb[34].mxu0 %v1746_v3  ;;  %v5449_v3 = vld [vmem:[%s5444_s17] ss:$0 sm:$0xff] }
  0xa9   : > { %4410 = vmatpush3.bf16.msra.mxu0 %v5086_v24  ;;  %4087 = vmatprep.mubr.f32.mxu0 %v1747_v8  ;;  %v1751_v24 = vld [vmem:[%s5399_s5 + $0x40] sm:$0xff] }
  0xaa   : > { %4412 = vmatprep.subr.bf16.mxu0 %v5095_v28 }
  0xac   : > { %4088 = vmatmul.mubr.f32.gmra.mrb[36].mxu0 %v1748_v9 }
  0xad   : > { %4414 = vmatpush3.bf16.msra.mxu0 %v5095_v28  ;;  %4090 = vmatprep.mubr.f32.mxu0 %v1749_v20  ;;  %v1753_v28 = vld [vmem:[%s5399_s5 + $0x50] sm:$0xff] }
  0xae   : > { %4416 = vmatprep.subr.bf16.mxu0 %v5105_v33 }
  0xb0   : > { %4091 = vmatmul.mubr.f32.gmra.mrb[38].mxu0 %v1750_v13 }
  0xb1   : > { %4418 = vmatpush3.bf16.msra.mxu0 %v5105_v33  ;;  %4093 = vmatprep.mubr.f32.mxu0 %v1751_v24  ;;  %v1755_v33 = vld [vmem:[%s5399_s5 + $0x60] sm:$0xff] }
  0xb2   : > { %4420 = vmatprep.subr.bf16.mxu0 %v5115_v38 }
  0xb4   : > { %4094 = vmatmul.mubr.f32.gmra.mrb[40].mxu0 %v1752_v14 }
  0xb5   : > { %4422 = vmatpush3.bf16.msra.mxu0 %v5115_v38  ;;  %4096 = vmatprep.mubr.f32.mxu0 %v1753_v28  ;;  %v1757_v38 = vld [vmem:[%s5399_s5 + $0x70] sm:$0xff] }
  0xb6   : > { %4424 = vmatprep.subr.bf16.mxu0 %v5125_v43 }
  0xb8   : > { %4097 = vmatmul.mubr.f32.gmra.mrb[42].mxu0 %v1754_v45 }
  0xb9   : > { %4426 = vmatpush3.bf16.msra.mxu0 %v5125_v43  ;;  %4099 = vmatprep.mubr.f32.mxu0 %v1755_v33  ;;  %v1760_v43 = vld [vmem:[%s5399_s5 + $0x88] sm:$0xff] }
  0xba   : > { %4428 = vmatprep.subr.bf16.mxu0 %v4363_v47 }
  0xbc   : > { %4100 = vmatmul.mubr.f32.gmra.mrb[44].mxu0 %v1756_v46 }
  0xbd   : > { %4430 = vmatpush3.bf16.msra.mxu0 %v4363_v47  ;;  %4102 = vmatprep.mubr.f32.mxu0 %v1757_v38  ;;  %v5438_v47 = vld [vmem:[%s6103_s7] ss:$0 sm:$0xff] }
  0xbe   : > { %4432 = vmatprep.subr.bf16.mxu0 %v4367_v53 }
  0xc0   : > { %4103 = vmatmul.mubr.f32.gmra.mrb[46].mxu0 %v1758_v48 }
  0xc1   : > { %4434 = vmatpush3.bf16.msra.mxu0 %v4367_v53  ;;  %4105 = vmatprep.mubr.f32.mxu0 %v1759_v49 }
  0xc4   : > { %4106 = vmatmul.mubr.f32.gmra.mrb[48].mxu0 %v1760_v43 }
  0xc5   : > { %4108 = vmatprep.mubr.f32.mxu0 %v1761_v51 }
  0xc8   : > { %4109 = vmatmul.mubr.f32.gmra.mrb[50].mxu0 %v1762_v52 }
  0xc9   : > { %4111 = vmatprep.mubr.f32.mxu0 %v1763_v54 }
  0xcc   : > { %4112 = vmatmul.mubr.f32.gmra.mrb[52].mxu0 %v1764_v56 }
 0x137   : > { %v3923_v53 = vpop.f32.mrb[0].mxu0 }
 0x138   : > { %v1411_v61 = vadd.f32 %v3923_v53, %v5438_v47  ;;  %v1244_v62 = vpop.f32.mrb[1].mxu0 }
 0x139   : > { %v1410_v2 = vadd.f32 %v5438_v47, %v1244_v62 }
 0x13a   : > { %v1443_v8 = vmax.f32 %v1411_v61, 0.0 }
 0x13b   : > { %v1442_v9 = vmax.f32 %v1410_v2, 0.0  ;;  %v3926_v20 = vpop.f32.mrb[2].mxu0 }
 0x13c   : > { %v1413_v13 = vadd.f32 %v3926_v20, %v5438_v47  ;;  %v1254_v24 = vpop.f32.mrb[3].mxu0  ;;  %v1481_v45 = vmul.f32 %v5449_v3, %v1443_v8 }
 0x13d   : > { %v1412_v14 = vadd.f32 %v5438_v47, %v1254_v24  ;;  %v1480_v28 = vmul.f32 %v5449_v3, %v1442_v9 }
 0x13e   : > { %v1445_v33 = vmax.f32 %v1413_v13, 0.0 }
 0x13f   : > { %v1444_v46 = vmax.f32 %v1412_v14, 0.0  ;;  %v3929_v38 = vpop.f32.mrb[4].mxu0  ;;  %4001 = vmatprep.mubr.f32.mxu1 %v1480_v28 }
 0x140   : > { %v1415_v48 = vadd.f32 %v3929_v38, %v5438_v47  ;;  %v1264_v49 = vpop.f32.mrb[5].mxu0  ;;  %4002 = vmatmul.mubr.f32.vlgmr.msra.gmra.mrb[0].mxu1 %v1481_v45  ;;  %v1483_v52 = vmul.f32 %v5449_v3, %v1445_v33 }
 0x141   : > { %v1482_v43 = vmul.f32 %v5449_v3, %v1444_v46  ;;  %v1414_v51 = vadd.f32 %v5438_v47, %v1264_v49  ;;  %4475 = vmatpush3.bf16.msra.mxu1 %v5046_v7 }
 0x142   : > { %v1447_v54 = vmax.f32 %v1415_v48, 0.0  ;;  %4468 = vmatprep.subr.bf16.mxu1 %v5176_v60 }
 0x143   : > { %v1446_v56 = vmax.f32 %v1414_v51, 0.0  ;;  %v3932_v53 = vpop.f32.mrb[6].mxu0  ;;  %4004 = vmatprep.mubr.f32.mxu1 %v1482_v43 }
 0x144   : > { %v1417_v61 = vadd.f32 %v3932_v53, %v5438_v47  ;;  %v1274_v62 = vpop.f32.mrb[7].mxu0  ;;  %4005 = vmatmul.mubr.f32.gmra.mrb[2].mxu1 %v1483_v52  ;;  %v1485_v7 = vmul.f32 %v5449_v3, %v1447_v54 }
 0x145   : > { %v1484_v2 = vmul.f32 %v5449_v3, %v1446_v56  ;;  %v1416_v8 = vadd.f32 %v5438_v47, %v1274_v62  ;;  %4476 = vmatpush3.bf16.msra.mxu1 %v5176_v60 }
 0x146   : > { %v1449_v9 = vmax.f32 %v1417_v61, 0.0  ;;  %4469 = vmatprep.subr.bf16.mxu1 %v5196_v1 }
 0x147   : > { %v1448_v20 = vmax.f32 %v1416_v8, 0.0  ;;  %v3935_v13 = vpop.f32.mrb[8].mxu0  ;;  %4007 = vmatprep.mubr.f32.mxu1 %v1484_v2 }
 0x148   : > { %v1419_v24 = vadd.f32 %v3935_v13, %v5438_v47  ;;  %v1284_v14 = vpop.f32.mrb[9].mxu0  ;;  %4008 = vmatmul.mubr.f32.gmra.mrb[4].mxu1 %v1485_v7  ;;  %v1487_v60 = vmul.f32 %v5449_v3, %v1449_v9 }
 0x149   : > { %v1486_v28 = vmul.f32 %v5449_v3, %v1448_v20  ;;  %v1418_v45 = vadd.f32 %v5438_v47, %v1284_v14  ;;  %4477 = vmatpush3.bf16.msra.mxu1 %v5196_v1 }
 0x14a   : > { %v1451_v33 = vmax.f32 %v1419_v24, 0.0  ;;  %4470 = vmatprep.subr.bf16.mxu1 %v5216_v6 }
 0x14b   : > { %v1450_v46 = vmax.f32 %v1418_v45, 0.0  ;;  %v3938_v38 = vpop.f32.mrb[10].mxu0  ;;  %4010 = vmatprep.mubr.f32.mxu1 %v1486_v28 }
 0x14c   : > { %v1421_v48 = vadd.f32 %v3938_v38, %v5438_v47  ;;  %v1294_v49 = vpop.f32.mrb[11].mxu0  ;;  %4011 = vmatmul.mubr.f32.gmra.mrb[6].mxu1 %v1487_v60  ;;  %v1489_v1 = vmul.f32 %v5449_v3, %v1451_v33 }
 0x14d   : > { %v1488_v43 = vmul.f32 %v5449_v3, %v1450_v46  ;;  %v1420_v51 = vadd.f32 %v5438_v47, %v1294_v49  ;;  %4478 = vmatpush3.bf16.msra.mxu1 %v5216_v6 }
 0x14e   : > { %v1453_v52 = vmax.f32 %v1421_v48, 0.0  ;;  %4471 = vmatprep.subr.bf16.mxu1 %v5236_v12 }
 0x14f   : > { %v1452_v54 = vmax.f32 %v1420_v51, 0.0  ;;  %v3941_v56 = vpop.f32.mrb[12].mxu0  ;;  %4013 = vmatprep.mubr.f32.mxu1 %v1488_v43 }
 0x150   : > { %v1423_v53 = vadd.f32 %v3941_v56, %v5438_v47  ;;  %v1304_v61 = vpop.f32.mrb[13].mxu0  ;;  %4014 = vmatmul.mubr.f32.gmra.mrb[8].mxu1 %v1489_v1  ;;  %v1491_v6 = vmul.f32 %v5449_v3, %v1453_v52 }
 0x151   : > { %v1490_v62 = vmul.f32 %v5449_v3, %v1452_v54  ;;  %v1422_v2 = vadd.f32 %v5438_v47, %v1304_v61  ;;  %4479 = vmatpush3.bf16.msra.mxu1 %v5236_v12 }
 0x152   : > { %v1455_v8 = vmax.f32 %v1423_v53, 0.0  ;;  %4472 = vmatprep.subr.bf16.mxu1 %v5256_v17 }
 0x153   : > { %v1454_v7 = vmax.f32 %v1422_v2, 0.0  ;;  %v3944_v9 = vpop.f32.mrb[14].mxu0  ;;  %4016 = vmatprep.mubr.f32.mxu1 %v1490_v62 }
 0x154   : > { %v1425_v20 = vadd.f32 %v3944_v9, %v5438_v47  ;;  %v1314_v13 = vpop.f32.mrb[15].mxu0  ;;  %4017 = vmatmul.mubr.f32.gmra.mrb[10].mxu1 %v1491_v6  ;;  %v1493_v12 = vmul.f32 %v5449_v3, %v1455_v8 }
 0x155   : > { %v1492_v24 = vmul.f32 %v5449_v3, %v1454_v7  ;;  %v1424_v14 = vadd.f32 %v5438_v47, %v1314_v13  ;;  %4480 = vmatpush3.bf16.msra.mxu1 %v5256_v17 }
 0x156   : > { %v1457_v28 = vmax.f32 %v1425_v20, 0.0  ;;  %4473 = vmatprep.subr.bf16.mxu1 %v5378_v50 }
 0x157   : > { %v1456_v45 = vmax.f32 %v1424_v14, 0.0  ;;  %v3947_v60 = vpop.f32.mrb[16].mxu0  ;;  %4019 = vmatprep.mubr.f32.mxu1 %v1492_v24 }
 0x158   : > { %v1427_v33 = vadd.f32 %v3947_v60, %v5438_v47  ;;  %v1324_v46 = vpop.f32.mrb[17].mxu0  ;;  %4020 = vmatmul.mubr.f32.gmra.mrb[12].mxu1 %v1493_v12  ;;  %v1495_v17 = vmul.f32 %v5449_v3, %v1457_v28 }
 0x159   : > { %v1494_v38 = vmul.f32 %v5449_v3, %v1456_v45  ;;  %v1426_v48 = vadd.f32 %v5438_v47, %v1324_v46  ;;  %4481 = vmatpush3.bf16.msra.mxu1 %v5378_v50 }
 0x15a   : > { %v1459_v49 = vmax.f32 %v1427_v33, 0.0  ;;  %4474 = vmatprep.subr.bf16.mxu1 %v5390_v57 }
 0x15b   : > { %v1458_v43 = vmax.f32 %v1426_v48, 0.0  ;;  %v3950_v51 = vpop.f32.mrb[18].mxu0  ;;  %4022 = vmatprep.mubr.f32.mxu1 %v1494_v38 }
 0x15c   : > { %v1429_v1 = vadd.f32 %v3950_v51, %v5438_v47  ;;  %v1334_v52 = vpop.f32.mrb[19].mxu0  ;;  %4023 = vmatmul.mubr.f32.gmra.mrb[14].mxu1 %v1495_v17  ;;  %v1497_v50 = vmul.f32 %v5449_v3, %v1459_v49 }
 0x15d   : > { %v1496_v54 = vmul.f32 %v5449_v3, %v1458_v43  ;;  %v1428_v56 = vadd.f32 %v5438_v47, %v1334_v52  ;;  %4482 = vmatpush3.bf16.msra.mxu1 %v5390_v57 }
 0x15e   : > { %v1461_v53 = vmax.f32 %v1429_v1, 0.0 }
 0x15f   : > { %v1460_v61 = vmax.f32 %v1428_v56, 0.0  ;;  %v3953_v62 = vpop.f32.mrb[20].mxu0  ;;  %4025 = vmatprep.mubr.f32.mxu1 %v1496_v54 }
 0x160   : > { %v1431_v2 = vadd.f32 %v3953_v62, %v5438_v47  ;;  %v1344_v6 = vpop.f32.mrb[21].mxu0  ;;  %4026 = vmatmul.mubr.f32.gmra.mrb[16].mxu1 %v1497_v50  ;;  %v1499_v9 = vmul.f32 %v5449_v3, %v1461_v53 }
 0x161   : > { %v1498_v8 = vmul.f32 %v5449_v3, %v1460_v61  ;;  %v1430_v7 = vadd.f32 %v5438_v47, %v1344_v6 }
 0x162   : > { %v1463_v20 = vmax.f32 %v1431_v2, 0.0 }
 0x163   : > { %v1462_v13 = vmax.f32 %v1430_v7, 0.0  ;;  %v3956_v24 = vpop.f32.mrb[22].mxu0  ;;  %4028 = vmatprep.mubr.f32.mxu1 %v1498_v8 }
 0x164   : > { %v1433_v57 = vadd.f32 %v3956_v24, %v5438_v47  ;;  %v1354_v14 = vpop.f32.mrb[23].mxu0  ;;  %4029 = vmatmul.mubr.f32.gmra.mrb[18].mxu1 %v1499_v9  ;;  %v1501_v45 = vmul.f32 %v5449_v3, %v1463_v20 }
 0x165   : > { %v1500_v12 = vmul.f32 %v5449_v3, %v1462_v13  ;;  %v1432_v28 = vadd.f32 %v5438_v47, %v1354_v14 }
 0x166   : > { %v1465_v60 = vmax.f32 %v1433_v57, 0.0 }
 0x167   : > { %v1464_v33 = vmax.f32 %v1432_v28, 0.0  ;;  %v3959_v46 = vpop.f32.mrb[24].mxu0  ;;  %4031 = vmatprep.mubr.f32.mxu1 %v1500_v12 }
 0x168   : > { %v1435_v38 = vadd.f32 %v3959_v46, %v5438_v47  ;;  %v1364_v48 = vpop.f32.mrb[25].mxu0  ;;  %4032 = vmatmul.mubr.f32.gmra.mrb[20].mxu1 %v1501_v45  ;;  %v1503_v43 = vmul.f32 %v5449_v3, %v1465_v60 }
 0x169   : > { %v1502_v17 = vmul.f32 %v5449_v3, %v1464_v33  ;;  %v1434_v49 = vadd.f32 %v5438_v47, %v1364_v48 }
 0x16a   : > { %v1467_v51 = vmax.f32 %v1435_v38, 0.0 }
 0x16b   : > { %v1466_v1 = vmax.f32 %v1434_v49, 0.0  ;;  %v3962_v52 = vpop.f32.mrb[26].mxu0  ;;  %4034 = vmatprep.mubr.f32.mxu1 %v1502_v17  ;;  %v1765_v49 = vld [vmem:[%s5399_s5 + $0xb0] sm:$0xff] }
 0x16c   : > { %v1437_v54 = vadd.f32 %v3962_v52, %v5438_v47  ;;  %v1374_v56 = vpop.f32.mrb[27].mxu0  ;;  %4035 = vmatmul.mubr.f32.gmra.mrb[22].mxu1 %v1503_v43  ;;  %v1505_v61 = vmul.f32 %v5449_v3, %v1467_v51  ;;  %v1767_v43 = vld [vmem:[%s5399_s5 + $0xc0] sm:$0xff]  ;;  %v1768_v51 = vld [vmem:[%s5399_s5 + $0xc8] sm:$0xff]  ;;  %v1770_v52 = vld [vmem:[%s5399_s5 + $0xd8] sm:$0xff] }
 0x16d   : > { %v1504_v50 = vmul.f32 %v5449_v3, %v1466_v1  ;;  %v1436_v53 = vadd.f32 %v5438_v47, %v1374_v56  ;;  %v1769_v1 = vld [vmem:[%s5399_s5 + $0xd0] sm:$0xff]  ;;  %v1772_v56 = vld [vmem:[%s5399_s5 + $0xe8] sm:$0xff] }
 0x16e   : > { %v1469_v62 = vmax.f32 %v1437_v54, 0.0  ;;  %v1771_v54 = vld [vmem:[%s5399_s5 + $0xe0] sm:$0xff] }
 0x16f   : > { %v1468_v2 = vmax.f32 %v1436_v53, 0.0  ;;  %v3965_v6 = vpop.f32.mrb[28].mxu0  ;;  %4037 = vmatprep.mubr.f32.mxu1 %v1504_v50  ;;  %v1773_v50 = vld [vmem:[%s5399_s5 + $0xf0] sm:$0xff]  ;;  %v1774_v53 = vld [vmem:[%s5399_s5 + $0xf8] sm:$0xff] }
 0x170   : > { %v1439_v8 = vadd.f32 %v3965_v6, %v5438_v47  ;;  %v1384_v7 = vpop.f32.mrb[29].mxu0  ;;  %4038 = vmatmul.mubr.f32.gmra.mrb[24].mxu1 %v1505_v61  ;;  %v1507_v13 = vmul.f32 %v5449_v3, %v1469_v62 }
 0x171   : > { %v1506_v9 = vmul.f32 %v5449_v3, %v1468_v2  ;;  %v1438_v20 = vadd.f32 %v5438_v47, %v1384_v7 }
 0x172   : > { %v1471_v24 = vmax.f32 %v1439_v8, 0.0 }
 0x173   : > { %v1470_v57 = vmax.f32 %v1438_v20, 0.0  ;;  %v3968_v14 = vpop.f32.mrb[30].mxu0  ;;  %4040 = vmatprep.mubr.f32.mxu1 %v1506_v9 }
 0x174   : > { %v1441_v12 = vadd.f32 %v3968_v14, %v5438_v47  ;;  %v1394_v28 = vpop.f32.mrb[31].mxu0  ;;  %4041 = vmatmul.mubr.f32.gmra.mrb[26].mxu1 %v1507_v13  ;;  %v1509_v33 = vmul.f32 %v5449_v3, %v1471_v24 }
 0x175   : > { %v1508_v45 = vmul.f32 %v5449_v3, %v1470_v57  ;;  %v1440_v60 = vadd.f32 %v5438_v47, %v1394_v28  ;;  %v1766_v47 = vld [vmem:[%s5399_s5 + $0xb8] sm:$0xff] }
 0x176   : > { %v1473_v46 = vmax.f32 %v1441_v12, 0.0 }
 0x177   : > { %v1472_v38 = vmax.f32 %v1440_v60, 0.0  ;;  %4043 = vmatprep.mubr.f32.mxu1 %v1508_v45  ;;  %v5540_v61 = vpop.f32.mrb[32].mxu0 }
 0x178   : > { %4044 = vmatmul.mubr.f32.gmra.mrb[28].mxu1 %v1509_v33  ;;  %v1511_v17 = vmul.f32 %v5449_v3, %v1473_v46  ;;  %v5542_v62 = vpop.f32.mrb[33].mxu0 }
 0x179   : > { %v1510_v48 = vmul.f32 %v5449_v3, %v1472_v38 }
 0x17b   : > { %4046 = vmatprep.mubr.f32.mxu1 %v1510_v48  ;;  %v5544_v2 = vpop.f32.mrb[34].mxu0 }
 0x17c   : > { %4047 = vmatmul.mubr.f32.gmra.mrb[30].mxu1 %v1511_v17  ;;  %v5546_v6 = vpop.f32.mrb[35].mxu0 }
 0x17d   : > { %4114 = vmatprep.mubr.f32.mxu1 %v1765_v49  ;;  %v2449_v49 = vld [vmem:[%s6108_s12] sm:$0xf] }
 0x17e   : > { %4209 = vmatprep.subr.msk.mxu1 %vm850_vm0, %v2449_v49 }
 0x17f   : > { %v5548_v8 = vpop.f32.mrb[36].mxu0 }
 0x180   : > { %4115 = vmatmul.mubr.f32.vlgmr.msra.gmra.mrb[22].mxu1 %v1766_v47  ;;  %v5550_v7 = vpop.f32.mrb[37].mxu0  ;;  %v2433_v47 = vld [vmem:[%s6107_s11] sm:$0xff] }
 0x181   : > { %4117 = vmatprep.mubr.f32.mxu1 %v1767_v43  ;;  %v2434_v43 = vld [vmem:[%s6107_s11 + $0x8] sm:$0xff]  ;;  %4210 = vmatpush3.msk.msra.mxu1 %vm850_vm0, %v2449_v49  ;;  %v2439_v49 = vld [vmem:[%s6107_s11 + $0x30] sm:$0xff] }
 0x183   : > { %v5552_v9 = vpop.f32.mrb[38].mxu0 }
 0x184   : > { %4118 = vmatmul.mubr.f32.gmra.mrb[24].mxu1 %v1768_v51  ;;  %v5554_v20 = vpop.f32.mrb[39].mxu0  ;;  %v4435_v51 = vpack.c.bf16 %v2434_v43, %v2433_v47  ;;  %v2440_v47 = vld [vmem:[%s6107_s11 + $0x38] sm:$0xff]  ;;  %v2442_v43 = vld [vmem:[%s6107_s11 + $0x48] sm:$0xff] }
 0x185   : > { %4120 = vmatprep.mubr.f32.mxu1 %v1769_v1  ;;  %v2435_v1 = vld [vmem:[%s6107_s11 + $0x10] sm:$0xff] }
 0x186   : > { %4436 = vmatprep.subr.bf16.mxu1 %v4435_v51 }
 0x187   : > { %v5556_v13 = vpop.f32.mrb[40].mxu0 }
 0x188   : > { %4121 = vmatmul.mubr.f32.gmra.mrb[26].mxu1 %v1770_v52  ;;  %v5558_v24 = vpop.f32.mrb[41].mxu0  ;;  %v2436_v52 = vld [vmem:[%s6107_s11 + $0x18] sm:$0xff] }
 0x189   : > { %4123 = vmatprep.mubr.f32.mxu1 %v1771_v54  ;;  %v4439_v54 = vpack.c.bf16 %v2436_v52, %v2435_v1 }
 0x18c   : > { %4124 = vmatmul.mubr.f32.gmra.mrb[28].mxu1 %v1772_v56  ;;  %v2437_v56 = vld [vmem:[%s6107_s11 + $0x20] sm:$0xff] }
 0x18d   : > { %4126 = vmatprep.mubr.f32.mxu1 %v1773_v50  ;;  %v2438_v50 = vld [vmem:[%s6107_s11 + $0x28] sm:$0xff] }
 0x190   : > { %4127 = vmatmul.mubr.f32.gmra.mrb[30].mxu1 %v1774_v53  ;;  %v4443_v53 = vpack.c.bf16 %v2438_v50, %v2437_v56 }
 0x191   : > { %4211 = vmatprep.mubr.msk.f32.mxu1 %vm753_vm1, %v5159_v55  ;;  %v5560_v55 = vpop.f32.mrb[42].mxu0 }
 0x192   : > { %v5562_v57 = vpop.f32.mrb[43].mxu0 }
 0x193   : > { %v5564_v14 = vpop.f32.mrb[44].mxu0 }
 0x194   : > { %v5566_v12 = vpop.f32.mrb[45].mxu0  ;;  %4212 = vmatmul.mubr.msk.f32.vlgmr.msra.gmra.mrb[32].mxu1 %vm753_vm1, %v5171_v58  ;;  %v4447_v58 = vpack.c.bf16 %v2440_v47, %v2439_v49 }
 0x195   : > { %v5568_v28 = vpop.f32.mrb[46].mxu0  ;;  %4214 = vmatprep.mubr.msk.f32.mxu1 %vm753_vm1, %v5174_v59  ;;  %4438 = vmatpush3.bf16.msra.mxu1 %v4435_v51  ;;  %v2441_v59 = vld [vmem:[%s6107_s11 + $0x40] sm:$0xff]  ;;  %v2444_v51 = vld [vmem:[%s6107_s11 + $0x58] sm:$0xff] }
 0x196   : > { %v5570_v45 = vpop.f32.mrb[47].mxu0  ;;  %4440 = vmatprep.subr.bf16.mxu1 %v4439_v54 }
 0x197   : > { %v5572_v60 = vpop.f32.mrb[48].mxu0 }
 0x198   : > { %v5574_v33 = vpop.f32.mrb[49].mxu0  ;;  %4215 = vmatmul.mubr.msk.f32.gmra.mrb[34].mxu1 %vm753_vm1, %v5189_v63  ;;  %v4451_v63 = vpack.c.bf16 %v2442_v43, %v2441_v59 }
 0x199   : > { %4217 = vmatprep.mubr.msk.f32.mxu1 %vm753_vm1, %v5193_v0  ;;  %4442 = vmatpush3.bf16.msra.mxu1 %v4439_v54  ;;  %v2443_v0 = vld [vmem:[%s6107_s11 + $0x50] sm:$0xff] }
 0x19a   : > { %4444 = vmatprep.subr.bf16.mxu1 %v4443_v53 }
 0x19b   : > { %v5576_v46 = vpop.f32.mrb[50].mxu0 }
 0x19c   : > { %v5578_v38 = vpop.f32.mrb[51].mxu0  ;;  %4218 = vmatmul.mubr.msk.f32.gmra.mrb[36].mxu1 %vm753_vm1, %v5209_v4  ;;  %v4455_v4 = vpack.c.bf16 %v2444_v51, %v2443_v0 }
 0x19d   : > { %4220 = vmatprep.mubr.msk.f32.mxu1 %vm753_vm1, %v5213_v5  ;;  %4446 = vmatpush3.bf16.msra.mxu1 %v4443_v53  ;;  %v5664_v5 = vld [vmem:[%s6106_s10] ss:$0 sm:$0xff] }
 0x19e   : > { %4448 = vmatprep.subr.bf16.mxu1 %v4447_v58 }
 0x19f   : > { %v5580_v48 = vpop.f32.mrb[52].mxu0 }
 0x1a0   : > { %v5582_v17 = vpop.f32.mrb[53].mxu0  ;;  %4221 = vmatmul.mubr.msk.f32.gmra.mrb[38].mxu1 %vm753_vm1, %v5229_v10 }
 0x1a1   : > { %4223 = vmatprep.mubr.msk.f32.mxu1 %vm753_vm1, %v5233_v11  ;;  %4450 = vmatpush3.bf16.msra.mxu1 %v4447_v58 }
 0x1a2   : > { %4452 = vmatprep.subr.bf16.mxu1 %v4451_v63 }
 0x1a4   : > { %4224 = vmatmul.mubr.msk.f32.gmra.mrb[40].mxu1 %vm753_vm1, %v5249_v15 }
 0x1a5   : > { %4226 = vmatprep.mubr.msk.f32.mxu1 %vm753_vm1, %v5253_v16  ;;  %4454 = vmatpush3.bf16.msra.mxu1 %v4451_v63 }
 0x1a6   : > { %4456 = vmatprep.subr.bf16.mxu1 %v4455_v4 }
 0x1a8   : > { %4227 = vmatmul.mubr.msk.f32.gmra.mrb[42].mxu1 %vm753_vm1, %v5263_v18 }
 0x1a9   : > { %4229 = vmatprep.mubr.msk.f32.mxu1 %vm753_vm1, %v5267_v19  ;;  %4458 = vmatpush3.bf16.msra.mxu1 %v4455_v4 }
 0x1ac   : > { %4230 = vmatmul.mubr.msk.f32.gmra.mrb[44].mxu1 %vm753_vm1, %v5275_v21 }
 0x1ad   : > { %4232 = vmatprep.mubr.msk.f32.mxu1 %vm753_vm1, %v5279_v22 }
 0x1b0   : > { %4233 = vmatmul.mubr.msk.f32.gmra.mrb[46].mxu1 %vm753_vm1, %v5286_v23 }
 0x1b1   : > { %4235 = vmatprep.mubr.msk.f32.mxu1 %vm753_vm1, %v5289_v25 }
 0x1b4   : > { %4236 = vmatmul.mubr.msk.f32.gmra.mrb[48].mxu1 %vm753_vm1, %v5296_v26 }
 0x1b5   : > { %4238 = vmatprep.mubr.msk.f32.mxu1 %vm753_vm1, %v5299_v27 }
 0x1b8   : > { %4239 = vmatmul.mubr.msk.f32.gmra.mrb[50].mxu1 %vm753_vm1, %v5306_v29 }
 0x1b9   : > { %4241 = vmatprep.mubr.msk.f32.mxu1 %vm753_vm1, %v5309_v30 }
 0x1bc   : > { %4242 = vmatmul.mubr.msk.f32.gmra.mrb[52].mxu1 %vm753_vm1, %v5316_v31 }
 0x1bd   : > { %4244 = vmatprep.mubr.msk.f32.mxu1 %vm753_vm1, %v5319_v32 }
 0x1c0   : > { %4245 = vmatmul.mubr.msk.f32.gmra.mrb[54].mxu1 %vm753_vm1, %v5326_v34 }
 0x1c1   : > { %4247 = vmatprep.mubr.msk.f32.mxu1 %vm753_vm1, %v5329_v35 }
 0x1c4   : > { %4248 = vmatmul.mubr.msk.f32.gmra.mrb[56].mxu1 %vm753_vm1, %v5336_v36 }
 0x1c5   : > { %4250 = vmatprep.mubr.msk.f32.mxu1 %vm753_vm1, %v5339_v37 }
 0x1c8   : > { %4251 = vmatmul.mubr.msk.f32.gmra.mrb[58].mxu1 %vm753_vm1, %v5346_v39 }
 0x1c9   : > { %4253 = vmatprep.mubr.msk.f32.mxu1 %vm753_vm1, %v5349_v40 }
 0x1cc   : > { %4254 = vmatmul.mubr.msk.f32.gmra.mrb[60].mxu1 %vm753_vm1, %v5356_v41 }
 0x1cd   : > { %4256 = vmatprep.mubr.msk.f32.mxu1 %vm753_vm1, %v5359_v42 }
 0x1d0   : > { %4257 = vmatmul.mubr.msk.f32.gmra.mrb[62].mxu1 %vm753_vm1, %v5366_v44 }
 0x213   : > { %v4003_v10 = vpop.f32.mrb[0].mxu1 }
 0x214   : > { %v1590_v11 = vadd.f32 %v4003_v10, %v5664_v5  ;;  %v1584_v15 = vpop.f32.mrb[1].mxu1 }
 0x215   : > { %v1585_v16 = vadd.f32 %v5664_v5, %v1584_v15 }
 0x216   : > { %v2017_v18 = vadd.f32 %v5540_v61, %v1590_v11 }
 0x217   : > { %v2016_v19 = vadd.f32 %v5542_v62, %v1585_v16  ;;  %v4006_v21 = vpop.f32.mrb[2].mxu1 }
 0x218   : > { %v2049_v22 = vmax.f32 %v2017_v18, 0.0  ;;  %v1600_v23 = vadd.f32 %v4006_v21, %v5664_v5  ;;  %v1594_v25 = vpop.f32.mrb[3].mxu1 }
 0x219   : > { %v2048_v26 = vmax.f32 %v2016_v19, 0.0  ;;  %v1595_v27 = vadd.f32 %v5664_v5, %v1594_v25 }
 0x21a   : > { %v2019_v29 = vadd.f32 %v5544_v2, %v1600_v23  ;;  %v2081_v31 = vmul.f32 %v5449_v3, %v2049_v22 }
 0x21b   : > { %v2080_v30 = vmul.f32 %v5449_v3, %v2048_v26  ;;  %v2018_v61 = vadd.f32 %v5546_v6, %v1595_v27  ;;  %v4009_v62 = vpop.f32.mrb[4].mxu1 }
 0x21c   : > { %v2051_v1 = vmax.f32 %v2019_v29, 0.0  ;;  %v1610_v52 = vadd.f32 %v4009_v62, %v5664_v5  ;;  %v1604_v54 = vpop.f32.mrb[5].mxu1 }
 0x21d   : > { %v2050_v32 = vmax.f32 %v2018_v61, 0.0  ;;  %v1605_v2 = vadd.f32 %v5664_v5, %v1604_v54  ;;  %4161 = vmatprep.mubr.f32.mxu0 %v2080_v30 }
 0x21e   : > { %v2021_v56 = vadd.f32 %v5548_v8, %v1610_v52  ;;  %4162 = vmatmul.mubr.f32.vlgmr.msra.gmra.mrb[54].mxu0 %v2081_v31  ;;  %v2083_v53 = vmul.f32 %v5449_v3, %v2051_v1 }
 0x21f   : > { %v2082_v6 = vmul.f32 %v5449_v3, %v2050_v32  ;;  %v2020_v34 = vadd.f32 %v5550_v7, %v1605_v2  ;;  %v4012_v50 = vpop.f32.mrb[6].mxu1 }
 0x220   : > { %v2053_v49 = vmax.f32 %v2021_v56, 0.0  ;;  %v1620_v35 = vadd.f32 %v4012_v50, %v5664_v5  ;;  %v1614_v47 = vpop.f32.mrb[7].mxu1 }
 0x221   : > { %v2052_v58 = vmax.f32 %v2020_v34, 0.0  ;;  %v1615_v8 = vadd.f32 %v5664_v5, %v1614_v47  ;;  %4164 = vmatprep.mubr.f32.mxu0 %v2082_v6 }
 0x222   : > { %v2023_v59 = vadd.f32 %v5552_v9, %v1620_v35  ;;  %4165 = vmatmul.mubr.f32.gmra.mrb[56].mxu0 %v2083_v53  ;;  %v2085_v63 = vmul.f32 %v5449_v3, %v2053_v49 }
 0x223   : > { %v2084_v7 = vmul.f32 %v5449_v3, %v2052_v58  ;;  %v2022_v36 = vadd.f32 %v5554_v20, %v1615_v8  ;;  %v4015_v43 = vpop.f32.mrb[8].mxu1 }
 0x224   : > { %v2055_v0 = vmax.f32 %v2023_v59, 0.0  ;;  %v1630_v37 = vadd.f32 %v4015_v43, %v5664_v5  ;;  %v1624_v51 = vpop.f32.mrb[9].mxu1 }
 0x225   : > { %v2054_v4 = vmax.f32 %v2022_v36, 0.0  ;;  %v1625_v9 = vadd.f32 %v5664_v5, %v1624_v51  ;;  %4167 = vmatprep.mubr.f32.mxu0 %v2084_v7 }
 0x226   : > { %v2025_v10 = vadd.f32 %v5556_v13, %v1630_v37  ;;  %4168 = vmatmul.mubr.f32.gmra.mrb[58].mxu0 %v2085_v63  ;;  %v2087_v15 = vmul.f32 %v5449_v3, %v2055_v0 }
 0x227   : > { %v2086_v20 = vmul.f32 %v5449_v3, %v2054_v4  ;;  %v2024_v39 = vadd.f32 %v5558_v24, %v1625_v9  ;;  %v4018_v11 = vpop.f32.mrb[10].mxu1 }
 0x228   : > { %v2057_v16 = vmax.f32 %v2025_v10, 0.0  ;;  %v1640_v40 = vadd.f32 %v4018_v11, %v5664_v5  ;;  %v1634_v18 = vpop.f32.mrb[11].mxu1 }
 0x229   : > { %v2056_v19 = vmax.f32 %v2024_v39, 0.0  ;;  %v1635_v13 = vadd.f32 %v5664_v5, %v1634_v18  ;;  %4170 = vmatprep.mubr.f32.mxu0 %v2086_v20 }
 0x22a   : > { %v2027_v21 = vadd.f32 %v5560_v55, %v1640_v40  ;;  %4171 = vmatmul.mubr.f32.gmra.mrb[60].mxu0 %v2087_v15  ;;  %v2089_v23 = vmul.f32 %v5449_v3, %v2057_v16 }
 0x22b   : > { %v2088_v24 = vmul.f32 %v5449_v3, %v2056_v19  ;;  %v2026_v41 = vadd.f32 %v5562_v57, %v1635_v13  ;;  %v4021_v22 = vpop.f32.mrb[12].mxu1 }
 0x22c   : > { %v2059_v25 = vmax.f32 %v2027_v21, 0.0  ;;  %v1650_v42 = vadd.f32 %v4021_v22, %v5664_v5  ;;  %v1644_v26 = vpop.f32.mrb[13].mxu1 }
 0x22d   : > { %v2058_v27 = vmax.f32 %v2026_v41, 0.0  ;;  %v1645_v29 = vadd.f32 %v5664_v5, %v1644_v26  ;;  %4173 = vmatprep.mubr.f32.mxu0 %v2088_v24 }
 0x22e   : > { %v2029_v55 = vadd.f32 %v5564_v14, %v1650_v42  ;;  %4174 = vmatmul.mubr.f32.gmra.mrb[62].mxu0 %v2089_v23  ;;  %v2091_v44 = vmul.f32 %v5449_v3, %v2059_v25 }
 0x22f   : > { %v2090_v30 = vmul.f32 %v5449_v3, %v2058_v27  ;;  %v2028_v57 = vadd.f32 %v5566_v12, %v1645_v29  ;;  %v4024_v61 = vpop.f32.mrb[14].mxu1 }
 0x230   : > { %v2061_v62 = vmax.f32 %v2029_v55, 0.0  ;;  %v1660_v31 = vadd.f32 %v4024_v61, %v5664_v5  ;;  %v1654_v1 = vpop.f32.mrb[15].mxu1 }
 0x231   : > { %v2060_v52 = vmax.f32 %v2028_v57, 0.0  ;;  %v1655_v54 = vadd.f32 %v5664_v5, %v1654_v1  ;;  %4176 = vmatprep.mubr.f32.mxu0 %v2090_v30 }
 0x232   : > { %v2031_v32 = vadd.f32 %v5568_v28, %v1660_v31  ;;  %4177 = vmatmul.mubr.f32.gmra.mrb[64].mxu0 %v2091_v44  ;;  %v2093_v12 = vmul.f32 %v5449_v3, %v2061_v62 }
 0x233   : > { %v2092_v14 = vmul.f32 %v5449_v3, %v2060_v52  ;;  %v2030_v2 = vadd.f32 %v5570_v45, %v1655_v54  ;;  %v4027_v56 = vpop.f32.mrb[16].mxu1 }
 0x234   : > { %v2063_v6 = vmax.f32 %v2031_v32, 0.0  ;;  %v1670_v34 = vadd.f32 %v4027_v56, %v5664_v5  ;;  %v1664_v50 = vpop.f32.mrb[17].mxu1 }
 0x235   : > { %v2062_v53 = vmax.f32 %v2030_v2, 0.0  ;;  %v1665_v49 = vadd.f32 %v5664_v5, %v1664_v50  ;;  %4179 = vmatprep.mubr.f32.mxu0 %v2092_v14 }
 0x236   : > { %v2033_v35 = vadd.f32 %v5572_v60, %v1670_v34  ;;  %4180 = vmatmul.mubr.f32.gmra.mrb[66].mxu0 %v2093_v12  ;;  %v2095_v45 = vmul.f32 %v5449_v3, %v2063_v6 }
 0x237   : > { %v2094_v28 = vmul.f32 %v5449_v3, %v2062_v53  ;;  %v2032_v47 = vadd.f32 %v5574_v33, %v1665_v49  ;;  %v4030_v58 = vpop.f32.mrb[18].mxu1 }
 0x238   : > { %v2065_v8 = vmax.f32 %v2033_v35, 0.0  ;;  %v1680_v59 = vadd.f32 %v4030_v58, %v5664_v5  ;;  %v1674_v7 = vpop.f32.mrb[19].mxu1 }
 0x239   : > { %v2064_v36 = vmax.f32 %v2032_v47, 0.0  ;;  %v1675_v43 = vadd.f32 %v5664_v5, %v1674_v7  ;;  %4182 = vmatprep.mubr.f32.mxu0 %v2094_v28  ;;  %v2446_v7 = vld [vmem:[%s6107_s11 + $0x68] sm:$0xff] }
 0x23a   : > { %v2035_v63 = vadd.f32 %v5576_v46, %v1680_v59  ;;  %4183 = vmatmul.mubr.f32.gmra.mrb[68].mxu0 %v2095_v45  ;;  %v2097_v33 = vmul.f32 %v5449_v3, %v2065_v8  ;;  %v2445_v59 = vld [vmem:[%s6107_s11 + $0x60] sm:$0xff] }
 0x23b   : > { %v2096_v60 = vmul.f32 %v5449_v3, %v2064_v36  ;;  %v2034_v0 = vadd.f32 %v5578_v38, %v1675_v43  ;;  %v4033_v37 = vpop.f32.mrb[20].mxu1  ;;  %v4459_v36 = vpack.c.bf16 %v2446_v7, %v2445_v59  ;;  %v2447_v43 = vld [vmem:[%s6107_s11 + $0x70] sm:$0xff] }
 0x23c   : > { %v2067_v51 = vmax.f32 %v2035_v63, 0.0  ;;  %v1690_v4 = vadd.f32 %v4033_v37, %v5664_v5  ;;  %v1684_v9 = vpop.f32.mrb[21].mxu1  ;;  %v2448_v63 = vld [vmem:[%s6107_s11 + $0x78] sm:$0xff] }
 0x23d   : > { %v2066_v10 = vmax.f32 %v2034_v0, 0.0  ;;  %v1685_v20 = vadd.f32 %v5664_v5, %v1684_v9  ;;  %4185 = vmatprep.mubr.f32.mxu0 %v2096_v60  ;;  %4460 = vmatprep.subr.bf16.mxu1 %v4459_v36  ;;  %v4463_v60 = vpack.c.bf16 %v2448_v63, %v2447_v43 }
 0x23e   : > { %v2037_v39 = vadd.f32 %v5580_v48, %v1690_v4  ;;  %4186 = vmatmul.mubr.f32.gmra.mrb[70].mxu0 %v2097_v33  ;;  %v2099_v38 = vmul.f32 %v5449_v3, %v2067_v51  ;;  %4462 = vmatpush3.bf16.msra.mxu1 %v4459_v36 }
 0x23f   : > { %v2098_v46 = vmul.f32 %v5449_v3, %v2066_v10  ;;  %v2036_v11 = vadd.f32 %v5582_v17, %v1685_v20  ;;  %4464 = vmatprep.subr.bf16.mxu1 %v4463_v60 }
 0x240   : > { %v2069_v15 = vmax.f32 %v2037_v39, 0.0 }
 0x241   : > { %v2068_v16 = vmax.f32 %v2036_v11, 0.0  ;;  %4188 = vmatprep.mubr.f32.mxu0 %v2098_v46 }
 0x242   : > { %4189 = vmatmul.mubr.f32.gmra.mrb[72].mxu0 %v2099_v38  ;;  %v2101_v18 = vmul.f32 %v5449_v3, %v2069_v15  ;;  %4466 = vmatpush3.bf16.msra.mxu1 %v4463_v60 }
 0x243   : > { %v2100_v40 = vmul.f32 %v5449_v3, %v2068_v16 }
 0x245   : > { %4191 = vmatprep.mubr.f32.mxu0 %v2100_v40 }
 0x246   : > { %4192 = vmatmul.mubr.f32.gmra.mrb[74].mxu0 %v2101_v18 }
 0x253   : > { %v4116_v19 = vpop.f32.mrb[22].mxu1 }
 0x254   : > { %v4527_v48 = vadd.f32 %v4116_v19, %v5664_v5  ;;  %v1967_v13 = vpop.f32.mrb[23].mxu1 }
 0x255   : > { %v4528_v21 = vadd.f32 %v5664_v5, %v1967_v13 }
 0x256   : > { %v2071_v24 = vmax.f32 %v4527_v48, 0.0 }
 0x257   : > { %v2070_v17 = vmax.f32 %v4528_v21, 0.0  ;;  %v4119_v41 = vpop.f32.mrb[24].mxu1 }
 0x258   : > { %v4529_v22 = vadd.f32 %v4119_v41, %v5664_v5  ;;  %v1977_v23 = vpop.f32.mrb[25].mxu1  ;;  %v2103_v26 = vmul.f32 %v5449_v3, %v2071_v24 }
 0x259   : > { %v2102_v25 = vmul.f32 %v5449_v3, %v2070_v17  ;;  %v4530_v42 = vadd.f32 %v5664_v5, %v1977_v23 }
 0x25a   : > { %v2073_v27 = vmax.f32 %v4529_v22, 0.0 }
 0x25b   : > { %v2072_v29 = vmax.f32 %v4530_v42, 0.0  ;;  %v4122_v55 = vpop.f32.mrb[26].mxu1  ;;  %4194 = vmatprep.mubr.f32.mxu0 %v2102_v25 }
 0x25c   : > { %v4531_v30 = vadd.f32 %v4122_v55, %v5664_v5  ;;  %v1987_v57 = vpop.f32.mrb[27].mxu1  ;;  %4195 = vmatmul.mubr.f32.gmra.mrb[76].mxu0 %v2103_v26  ;;  %v2105_v62 = vmul.f32 %v5449_v3, %v2073_v27 }
 0x25d   : > { %v2104_v61 = vmul.f32 %v5449_v3, %v2072_v29  ;;  %v4532_v44 = vadd.f32 %v5664_v5, %v1987_v57 }
 0x25e   : > { %v2075_v31 = vmax.f32 %v4531_v30, 0.0  ;;  %v5816_v30 = vld [vmem:[%s5444_s17] ss:$0 sm:$0xff]  ;;  %s3577_s17 = sshll.u32 %s4867_s21, 12  ;;  %s4877_s21 = smov [#allocation2]  }
 0x25f   : > { %v2074_v1 = vmax.f32 %v4532_v44, 0.0  ;;  %v4125_v52 = vpop.f32.mrb[28].mxu1  ;;  %4197 = vmatprep.mubr.f32.mxu0 %v2104_v61  ;;  %s5899_s5 = scalar_lea.hbm %s6111_s15, %s3577_s17  ;;  %s4801_s3 = sshll.u32 %s4877_s21, 4  ;;  %s4802_s3 = int_to_ptr.vmem [resolvable:$false] %s4801_s3 }
 0x260   : > { %v4533_v54 = vadd.f32 %v4125_v52, %v5664_v5  ;;  %v1997_v32 = vpop.f32.mrb[29].mxu1  ;;  %4198 = vmatmul.mubr.f32.gmra.mrb[78].mxu0 %v2105_v62  ;;  %v2107_v56 = vmul.f32 %v5449_v3, %v2075_v31  ;;  %s4803_s6 = scalar_lea.vmem %s4802_s3, 8192  ;;  %p4804_p1 = scmp.lt.s32.totalorder %s5901_s1, %s4802_s3 }
 0x261   : > { %v2106_v14 = vmul.f32 %v5449_v3, %v2074_v1  ;;  %v4534_v2 = vadd.f32 %v5664_v5, %v1997_v32  ;;  %p4805_p2 = scmp.lt.s32.totalorder %s4803_s6, %s4797_s0 }
 0x262   : > { %v2077_v12 = vmax.f32 %v4533_v54, 0.0 }
 0x263   : > { %v2076_v6 = vmax.f32 %v4534_v2, 0.0  ;;  %v4128_v34 = vpop.f32.mrb[30].mxu1  ;;  %4200 = vmatprep.mubr.f32.mxu0 %v2106_v14  ;;  %p4806_p3 = por %p4805_p2, %p4804_p1 }
 0x264   : > { %v4535_v50 = vadd.f32 %v4128_v34, %v5664_v5  ;;  %v2007_v53 = vpop.f32.mrb[31].mxu1  ;;  %4201 = vmatmul.mubr.f32.gmra.mrb[80].mxu0 %v2107_v56  ;;  %v2109_v28 = vmul.f32 %v5449_v3, %v2077_v12 }
 0x265   : > { %v2108_v49 = vmul.f32 %v5449_v3, %v2076_v6  ;;  %v4536_v35 = vadd.f32 %v5664_v5, %v2007_v53  ;;  %p4807_p5 = pnand %p4806_p3, %p4800_p0 }
 0x266   : > { %v2079_v47 = vmax.f32 %v4535_v50, 0.0 }
 0x267   : > { %v2078_v58 = vmax.f32 %v4536_v35, 0.0  ;;  %4203 = vmatprep.mubr.f32.mxu0 %v2108_v49 }
 0x268   : > { %4204 = vmatmul.mubr.f32.gmra.mrb[82].mxu0 %v2109_v28  ;;  %v2111_v8 = vmul.f32 %v5449_v3, %v2079_v47 }
 0x269   : > { %v2110_v45 = vmul.f32 %v5449_v3, %v2078_v58 }
 0x26b   : > { %4206 = vmatprep.mubr.f32.mxu0 %v2110_v45 }
 0x26c   : > { %4207 = vmatmul.mubr.f32.gmra.mrb[84].mxu0 %v2111_v8 }
 0x2f1   : > { %v4163_v0 = vpop.f32.mrb[54].mxu0 }
 0x2f2   : > { %v2184_v37 = vadd.f32 %v4163_v0, %v5664_v5  ;;  %v2178_v33 = vpop.f32.mrb[55].mxu0 }
 0x2f3   : > { %v2179_v51 = vadd.f32 %v5664_v5, %v2178_v33 }
 0x2f4   : > { %v2338_v4 = vmax.f32 %v2184_v37, 0.0 }
 0x2f5   : > { %v2337_v9 = vmax.f32 %v2179_v51, 0.0  ;;  %v4166_v10 = vpop.f32.mrb[56].mxu0 }
 0x2f6   : > { %v2370_v20 = vmul.f32 %v5449_v3, %v2338_v4  ;;  %v2194_v39 = vadd.f32 %v4166_v10, %v5664_v5  ;;  %v2188_v46 = vpop.f32.mrb[57].mxu0 }
 0x2f7   : > { %v2369_v11 = vmul.f32 %v5449_v3, %v2337_v9  ;;  %v2189_v38 = vadd.f32 %v5664_v5, %v2188_v46 }
 0x2f8   : > { %2402 = vst [vmem:[%s5799_s22 + $0x8] sm:$0xff] %v2370_v20  ;;  %v2340_v15 = vmax.f32 %v2194_v39, 0.0 }
 0x2f9   : > { %2401 = vst [vmem:[%s5799_s22] sm:$0xff] %v2369_v11  ;;  %v2339_v16 = vmax.f32 %v2189_v38, 0.0  ;;  %v4169_v40 = vpop.f32.mrb[58].mxu0  ;;  %4291 = vmatprep.mubr.f32.mxu1 %v2369_v11 }
 0x2fa   : > { %v2372_v18 = vmul.f32 %v5449_v3, %v2340_v15  ;;  %v2204_v19 = vadd.f32 %v4169_v40, %v5664_v5  ;;  %v2198_v48 = vpop.f32.mrb[59].mxu0  ;;  %4292 = vmatmul.mubr.f32.vlgmr.msra.gmra.mrb[32].mxu1 %v2370_v20 }
 0x2fb   : > { %v2371_v13 = vmul.f32 %v5449_v3, %v2339_v16  ;;  %v2199_v21 = vadd.f32 %v5664_v5, %v2198_v48 }
 0x2fc   : > { %2404 = vst [vmem:[%s5799_s22 + $0x18] sm:$0xff] %v2372_v18  ;;  %v2342_v24 = vmax.f32 %v2204_v19, 0.0 }
 0x2fd   : > { %2403 = vst [vmem:[%s5799_s22 + $0x10] sm:$0xff] %v2371_v13  ;;  %v2341_v17 = vmax.f32 %v2199_v21, 0.0  ;;  %v4172_v41 = vpop.f32.mrb[60].mxu0  ;;  %4294 = vmatprep.mubr.f32.mxu1 %v2371_v13 }
 0x2fe   : > { %v2374_v22 = vmul.f32 %v5449_v3, %v2342_v24  ;;  %v2214_v23 = vadd.f32 %v4172_v41, %v5664_v5  ;;  %v2208_v25 = vpop.f32.mrb[61].mxu0  ;;  %4295 = vmatmul.mubr.f32.gmra.mrb[34].mxu1 %v2372_v18 }
 0x2ff   : > { %v2373_v42 = vmul.f32 %v5449_v3, %v2341_v17  ;;  %v2209_v26 = vadd.f32 %v5664_v5, %v2208_v25 }
 0x300   : > { %2406 = vst [vmem:[%s5799_s22 + $0x28] sm:$0xff] %v2374_v22  ;;  %v2344_v27 = vmax.f32 %v2214_v23, 0.0 }
 0x301   : > { %2405 = vst [vmem:[%s5799_s22 + $0x20] sm:$0xff] %v2373_v42  ;;  %v2343_v29 = vmax.f32 %v2209_v26, 0.0  ;;  %v4175_v55 = vpop.f32.mrb[62].mxu0  ;;  %4297 = vmatprep.mubr.f32.mxu1 %v2373_v42 }
 0x302   : > { %v2376_v57 = vmul.f32 %v5816_v30, %v2344_v27  ;;  %v2224_v61 = vadd.f32 %v4175_v55, %v5664_v5  ;;  %v2218_v44 = vpop.f32.mrb[63].mxu0  ;;  %4298 = vmatmul.mubr.f32.gmra.mrb[36].mxu1 %v2374_v22 }
 0x303   : > { %v2375_v3 = vmul.f32 %v5816_v30, %v2343_v29  ;;  %v2219_v62 = vadd.f32 %v5664_v5, %v2218_v44 }
 0x304   : > { %2408 = vst [vmem:[%s5799_s22 + $0x38] sm:$0xff] %v2376_v57  ;;  %v2346_v31 = vmax.f32 %v2224_v61, 0.0 }
 0x305   : > { %2407 = vst [vmem:[%s5799_s22 + $0x30] sm:$0xff] %v2375_v3  ;;  %v2345_v1 = vmax.f32 %v2219_v62, 0.0  ;;  %v4178_v52 = vpop.f32.mrb[64].mxu0  ;;  %4300 = vmatprep.mubr.f32.mxu1 %v2375_v3 }
 0x306   : > { %v2378_v54 = vmul.f32 %v5816_v30, %v2346_v31  ;;  %v2234_v32 = vadd.f32 %v4178_v52, %v5664_v5  ;;  %v2228_v14 = vpop.f32.mrb[65].mxu0  ;;  %4301 = vmatmul.mubr.f32.gmra.mrb[38].mxu1 %v2376_v57 }
 0x307   : > { %v2377_v2 = vmul.f32 %v5816_v30, %v2345_v1  ;;  %v2229_v56 = vadd.f32 %v5664_v5, %v2228_v14 }
 0x308   : > { %2410 = vst [vmem:[%s5799_s22 + $0x48] sm:$0xff] %v2378_v54  ;;  %v2348_v12 = vmax.f32 %v2234_v32, 0.0 }
 0x309   : > { %2409 = vst [vmem:[%s5799_s22 + $0x40] sm:$0xff] %v2377_v2  ;;  %v2347_v6 = vmax.f32 %v2229_v56, 0.0  ;;  %v4181_v34 = vpop.f32.mrb[66].mxu0  ;;  %4303 = vmatprep.mubr.f32.mxu1 %v2377_v2 }
 0x30a   : > { %v2380_v50 = vmul.f32 %v5816_v30, %v2348_v12  ;;  %v2244_v53 = vadd.f32 %v4181_v34, %v5664_v5  ;;  %v2238_v49 = vpop.f32.mrb[67].mxu0  ;;  %4304 = vmatmul.mubr.f32.gmra.mrb[40].mxu1 %v2378_v54 }
 0x30b   : > { %v2379_v35 = vmul.f32 %v5816_v30, %v2347_v6  ;;  %v2239_v28 = vadd.f32 %v5664_v5, %v2238_v49 }
 0x30c   : > { %2412 = vst [vmem:[%s5799_s22 + $0x58] sm:$0xff] %v2380_v50  ;;  %v2350_v47 = vmax.f32 %v2244_v53, 0.0 }
 0x30d   : > { %2411 = vst [vmem:[%s5799_s22 + $0x50] sm:$0xff] %v2379_v35  ;;  %v2349_v58 = vmax.f32 %v2239_v28, 0.0  ;;  %v4184_v45 = vpop.f32.mrb[68].mxu0  ;;  %4306 = vmatprep.mubr.f32.mxu1 %v2379_v35 }
 0x30e   : > { %v2382_v8 = vmul.f32 %v5816_v30, %v2350_v47  ;;  %v2254_v59 = vadd.f32 %v4184_v45, %v5664_v5  ;;  %v2248_v7 = vpop.f32.mrb[69].mxu0  ;;  %4307 = vmatmul.mubr.f32.gmra.mrb[42].mxu1 %v2380_v50 }
 0x30f   : > { %v2381_v36 = vmul.f32 %v5816_v30, %v2349_v58  ;;  %v2249_v43 = vadd.f32 %v5664_v5, %v2248_v7 }
 0x310   : > { %2414 = vst [vmem:[%s5799_s22 + $0x68] sm:$0xff] %v2382_v8  ;;  %v2352_v63 = vmax.f32 %v2254_v59, 0.0 }
 0x311   : > { %2413 = vst [vmem:[%s5799_s22 + $0x60] sm:$0xff] %v2381_v36  ;;  %v2351_v60 = vmax.f32 %v2249_v43, 0.0  ;;  %v4187_v0 = vpop.f32.mrb[70].mxu0  ;;  %4309 = vmatprep.mubr.f32.mxu1 %v2381_v36 }
 0x312   : > { %v2384_v37 = vmul.f32 %v5816_v30, %v2352_v63  ;;  %v2264_v33 = vadd.f32 %v4187_v0, %v5664_v5  ;;  %v2258_v51 = vpop.f32.mrb[71].mxu0  ;;  %4310 = vmatmul.mubr.f32.gmra.mrb[44].mxu1 %v2382_v8 }
 0x313   : > { %v2383_v4 = vmul.f32 %v5816_v30, %v2351_v60  ;;  %v2259_v9 = vadd.f32 %v5664_v5, %v2258_v51 }
 0x314   : > { %2416 = vst [vmem:[%s5799_s22 + $0x78] sm:$0xff] %v2384_v37  ;;  %v2354_v10 = vmax.f32 %v2264_v33, 0.0 }
 0x315   : > { %2415 = vst [vmem:[%s5799_s22 + $0x70] sm:$0xff] %v2383_v4  ;;  %v2353_v20 = vmax.f32 %v2259_v9, 0.0  ;;  %v4190_v39 = vpop.f32.mrb[72].mxu0  ;;  %4312 = vmatprep.mubr.f32.mxu1 %v2383_v4 }
 0x316   : > { %v2386_v46 = vmul.f32 %v5816_v30, %v2354_v10  ;;  %v2274_v11 = vadd.f32 %v4190_v39, %v5664_v5  ;;  %v2268_v38 = vpop.f32.mrb[73].mxu0  ;;  %4313 = vmatmul.mubr.f32.gmra.mrb[46].mxu1 %v2384_v37 }
 0x317   : > { %v2385_v15 = vmul.f32 %v5816_v30, %v2353_v20  ;;  %v2269_v16 = vadd.f32 %v5664_v5, %v2268_v38 }
 0x318   : > { %2418 = vst [vmem:[%s5799_s22 + $0x88] sm:$0xff] %v2386_v46  ;;  %v2356_v40 = vmax.f32 %v2274_v11, 0.0 }
 0x319   : > { %2417 = vst [vmem:[%s5799_s22 + $0x80] sm:$0xff] %v2385_v15  ;;  %v2355_v18 = vmax.f32 %v2269_v16, 0.0  ;;  %v4193_v19 = vpop.f32.mrb[74].mxu0  ;;  %4315 = vmatprep.mubr.f32.mxu1 %v2385_v15 }
 0x31a   : > { %v2388_v48 = vmul.f32 %v5816_v30, %v2356_v40  ;;  %v2284_v13 = vadd.f32 %v4193_v19, %v5664_v5  ;;  %v2278_v21 = vpop.f32.mrb[75].mxu0  ;;  %4316 = vmatmul.mubr.f32.gmra.mrb[48].mxu1 %v2386_v46 }
 0x31b   : > { %v2387_v24 = vmul.f32 %v5816_v30, %v2355_v18  ;;  %v2279_v17 = vadd.f32 %v5664_v5, %v2278_v21 }
 0x31c   : > { %2420 = vst [vmem:[%s5799_s22 + $0x98] sm:$0xff] %v2388_v48  ;;  %v2358_v41 = vmax.f32 %v2284_v13, 0.0 }
 0x31d   : > { %2419 = vst [vmem:[%s5799_s22 + $0x90] sm:$0xff] %v2387_v24  ;;  %v2357_v22 = vmax.f32 %v2279_v17, 0.0  ;;  %4318 = vmatprep.mubr.f32.mxu1 %v2387_v24 }
 0x31e   : > { %v2390_v23 = vmul.f32 %v5816_v30, %v2358_v41  ;;  %4319 = vmatmul.mubr.f32.gmra.mrb[50].mxu1 %v2388_v48 }
 0x31f   : > { %v2389_v25 = vmul.f32 %v5816_v30, %v2357_v22 }
 0x320   : > { %2422 = vst [vmem:[%s5799_s22 + $0xa8] sm:$0xff] %v2390_v23 }
 0x321   : > { %2421 = vst [vmem:[%s5799_s22 + $0xa0] sm:$0xff] %v2389_v25  ;;  %4321 = vmatprep.mubr.f32.mxu1 %v2389_v25 }
 0x322   : > { %4322 = vmatmul.mubr.f32.gmra.mrb[52].mxu1 %v2390_v23 }
 0x32f   : > { %v4196_v42 = vpop.f32.mrb[76].mxu0 }
 0x330   : > { %v2294_v26 = vadd.f32 %v4196_v42, %v5664_v5  ;;  %v2288_v27 = vpop.f32.mrb[77].mxu0 }
 0x331   : > { %v2289_v29 = vadd.f32 %v5664_v5, %v2288_v27 }
 0x332   : > { %v2360_v55 = vmax.f32 %v2294_v26, 0.0 }
 0x333   : > { %v2359_v57 = vmax.f32 %v2289_v29, 0.0  ;;  %v4199_v61 = vpop.f32.mrb[78].mxu0 }
 0x334   : > { %v2392_v44 = vmul.f32 %v5816_v30, %v2360_v55  ;;  %v2304_v3 = vadd.f32 %v4199_v61, %v5664_v5  ;;  %v2298_v62 = vpop.f32.mrb[79].mxu0 }
 0x335   : > { %v2391_v31 = vmul.f32 %v5816_v30, %v2359_v57  ;;  %v2299_v1 = vadd.f32 %v5664_v5, %v2298_v62 }
 0x336   : > { %2424 = vst [vmem:[%s5799_s22 + $0xb8] sm:$0xff] %v2392_v44  ;;  %v2362_v52 = vmax.f32 %v2304_v3, 0.0 }
 0x337   : > { %2423 = vst [vmem:[%s5799_s22 + $0xb0] sm:$0xff] %v2391_v31  ;;  %v2361_v54 = vmax.f32 %v2299_v1, 0.0  ;;  %v4202_v32 = vpop.f32.mrb[80].mxu0  ;;  %4324 = vmatprep.mubr.f32.mxu1 %v2391_v31 }
 0x338   : > { %v2394_v14 = vmul.f32 %v5816_v30, %v2362_v52  ;;  %v2314_v2 = vadd.f32 %v4202_v32, %v5664_v5  ;;  %v2308_v56 = vpop.f32.mrb[81].mxu0  ;;  %4325 = vmatmul.mubr.f32.gmra.mrb[54].mxu1 %v2392_v44 }
 0x339   : > { %v2393_v12 = vmul.f32 %v5816_v30, %v2361_v54  ;;  %v2309_v6 = vadd.f32 %v5664_v5, %v2308_v56 }
 0x33a   : > { %2426 = vst [vmem:[%s5799_s22 + $0xc8] sm:$0xff] %v2394_v14  ;;  %v2364_v34 = vmax.f32 %v2314_v2, 0.0 }
 0x33b   : > { %2425 = vst [vmem:[%s5799_s22 + $0xc0] sm:$0xff] %v2393_v12  ;;  %v2363_v50 = vmax.f32 %v2309_v6, 0.0  ;;  %v4205_v53 = vpop.f32.mrb[82].mxu0  ;;  %4327 = vmatprep.mubr.f32.mxu1 %v2393_v12 }
 0x33c   : > { %v2396_v49 = vmul.f32 %v5816_v30, %v2364_v34  ;;  %v2324_v35 = vadd.f32 %v4205_v53, %v5664_v5  ;;  %v2318_v28 = vpop.f32.mrb[83].mxu0  ;;  %4328 = vmatmul.mubr.f32.gmra.mrb[56].mxu1 %v2394_v14 }
 0x33d   : > { %v2395_v47 = vmul.f32 %v5816_v30, %v2363_v50  ;;  %v2319_v58 = vadd.f32 %v5664_v5, %v2318_v28 }
 0x33e   : > { %2428 = vst [vmem:[%s5799_s22 + $0xd8] sm:$0xff] %v2396_v49  ;;  %v2366_v45 = vmax.f32 %v2324_v35, 0.0 }
 0x33f   : > { %2427 = vst [vmem:[%s5799_s22 + $0xd0] sm:$0xff] %v2395_v47  ;;  %v2365_v8 = vmax.f32 %v2319_v58, 0.0  ;;  %v4208_v59 = vpop.f32.mrb[84].mxu0  ;;  %4330 = vmatprep.mubr.f32.mxu1 %v2395_v47 }
 0x340   : > { %v2398_v7 = vmul.f32 %v5816_v30, %v2366_v45  ;;  %v2334_v36 = vadd.f32 %v4208_v59, %v5664_v5  ;;  %v2328_v43 = vpop.f32.mrb[85].mxu0  ;;  %4331 = vmatmul.mubr.f32.gmra.mrb[58].mxu1 %v2396_v49 }
 0x341   : > { %v2397_v63 = vmul.f32 %v5816_v30, %v2365_v8  ;;  %v2329_v60 = vadd.f32 %v5664_v5, %v2328_v43 }
 0x342   : > { %2430 = vst [vmem:[%s5799_s22 + $0xe8] sm:$0xff] %v2398_v7  ;;  %v2368_v0 = vmax.f32 %v2334_v36, 0.0 }
 0x343   : > { %2429 = vst [vmem:[%s5799_s22 + $0xe0] sm:$0xff] %v2397_v63  ;;  %v2367_v37 = vmax.f32 %v2329_v60, 0.0  ;;  %4333 = vmatprep.mubr.f32.mxu1 %v2397_v63 }
 0x344   : > { %v2400_v33 = vmul.f32 %v5816_v30, %v2368_v0  ;;  %4334 = vmatmul.mubr.f32.gmra.mrb[60].mxu1 %v2398_v7 }
 0x345   : > { %v2399_v51 = vmul.f32 %v5816_v30, %v2367_v37 }
 0x346   : > { %2432 = vst [vmem:[%s5799_s22 + $0xf8] sm:$0xff] %v2400_v33 }
 0x347   : > { %2431 = vst [vmem:[%s5799_s22 + $0xf0] sm:$0xff] %v2399_v51  ;;  %4336 = vmatprep.mubr.f32.mxu1 %v2399_v51 }
 0x348   : > { %4337 = vmatmul.mubr.f32.gmra.mrb[62].mxu1 %v2400_v33 }
 0x349   : > { %4810 = shalt.err (!%p4807_p5)
}
 0x34a   : > { %s4811_s4 = scalar_lea.hbm %s5899_s5, 4096  ;;  %s4815_s24 = scalar_lea.hbm %s6111_s15, 8192 }
 0x34b   : > { %p4812_p6 = scmp.ne.s32.totalorder %s5899_s5, %s4811_s4  ;;  %p4816_p10 = scmp.lt.u32.totalorder %s5899_s5, %s6111_s15 }
 0x34c   : > { %p4817_p11 = scmp.lt.u32.totalorder %s4815_s24, %s4811_s4  ;;  %p4819_p13 = scmp.lt.u32.totalorder %s4811_s4, %s5899_s5 }
 0x34d   : > { %p4813_p7 = pnand %p4812_p6, %p5000_p4 }
 0x34e   : > { %p4818_p12 = por %p4817_p11, %p4816_p10 }
 0x34f   : > { %p4814_p9 = pneg %p4813_p7 }
 0x350   : > { %p4820_p0 = por %p4819_p13, %p4818_p12 }
 0x352   : > { %p4821_p1 = pnand %p4820_p0, %p4814_p9 }
 0x354   : > { %4824 = shalt.err (!%p4821_p1)
}
 0x355   : > { %s4878_s0 = smov 128   ;;  %s4879_s3 = smov 8   ;;  %v5932_v5 = vld [vmem:[%s6109_s13] ss:$0 sm:$0xff] }
 0x356   : > { %4611 = dma.vmem_to_hbm [thread:$0]  (%p5000_p4), %s5901_s1, 4096, %s5899_s5, %s5905_s29, %s4878_s0, %s4878_s0, %s4879_s3  }
 0x357   : > { %s638_s5 = scalar_lea.vmem %s6098_s2, %s5025_s27  ;;  %s5958_s4 = scalar_lea.vmem %s6110_s14, %s5029_s26 }
 0x358   : > { %v5951_v45 = vld [vmem:[%s638_s5] ss:$0 sm:$0xff] }
 0x3cd   : > { %v4293_v30 = vpop.f32.mrb[32].mxu1 }
 0x3ce   : > { %v2911_v4 = vadd.f32 %v4293_v30, %v5932_v5  ;;  %v2744_v9 = vpop.f32.mrb[33].mxu1 }
 0x3cf   : > { %v2910_v10 = vadd.f32 %v5932_v5, %v2744_v9 }
 0x3d0   : > { %v3535_v20 = vmul.f32 -1.442695, %v2911_v4 }
 0x3d1   : > { %v3534_v39 = vmul.f32 -1.442695, %v2910_v10  ;;  %v4296_v46 = vpop.f32.mrb[34].mxu1 }
 0x3d2   : > { %4668 = vpow2.f32 %v3535_v20  ;;  %v2913_v11 = vadd.f32 %v4296_v46, %v5932_v5  ;;  %v2754_v38 = vpop.f32.mrb[35].mxu1 }
 0x3d3   : > { %4670 = vpow2.f32 %v3534_v39  ;;  %v2912_v15 = vadd.f32 %v5932_v5, %v2754_v38 }
 0x3d4   : > { %v3537_v16 = vmul.f32 -1.442695, %v2913_v11 }
 0x3d5   : > { %v3536_v40 = vmul.f32 -1.442695, %v2912_v15  ;;  %v4299_v18 = vpop.f32.mrb[36].mxu1 }
 0x3d6   : > { %4672 = vpow2.f32 %v3537_v16  ;;  %v2915_v19 = vadd.f32 %v4299_v18, %v5932_v5  ;;  %v2764_v48 = vpop.f32.mrb[37].mxu1 }
 0x3d7   : > { %4674 = vpow2.f32 %v3536_v40  ;;  %v2914_v13 = vadd.f32 %v5932_v5, %v2764_v48 }
 0x3d8   : > { %v3539_v21 = vmul.f32 -1.442695, %v2915_v19 }
 0x3d9   : > { %v3538_v24 = vmul.f32 -1.442695, %v2914_v13  ;;  %v4302_v17 = vpop.f32.mrb[38].mxu1 }
 0x3da   : > { %4676 = vpow2.f32 %v3539_v21  ;;  %v2917_v41 = vadd.f32 %v4302_v17, %v5932_v5  ;;  %v2774_v22 = vpop.f32.mrb[39].mxu1 }
 0x3db   : > { %4678 = vpow2.f32 %v3538_v24  ;;  %v2916_v23 = vadd.f32 %v5932_v5, %v2774_v22 }
 0x3dc   : > { %v4669_v25 = vpop.eup %4668  ;;  %v3541_v42 = vmul.f32 -1.442695, %v2917_v41 }
 0x3dd   : > { %v4671_v26 = vpop.eup %4670  ;;  %v3039_v27 = vadd.f32 1.0, %v4669_v25  ;;  %v3540_v29 = vmul.f32 -1.442695, %v2916_v23  ;;  %v4305_v55 = vpop.f32.mrb[40].mxu1 }
 0x3de   : > { %v3038_v57 = vadd.f32 1.0, %v4671_v26  ;;  %4680 = vpow2.f32 %v3541_v42  ;;  %v2919_v61 = vadd.f32 %v4305_v55, %v5932_v5  ;;  %v2784_v44 = vpop.f32.mrb[41].mxu1 }
 0x3df   : > { %4682 = vrcp.f32 %v3039_v27  ;;  %v2918_v3 = vadd.f32 %v5932_v5, %v2784_v44 }
 0x3e0   : > { %v4673_v62 = vpop.eup %4672  ;;  %4684 = vrcp.f32 %v3038_v57  ;;  %v3543_v31 = vmul.f32 -1.442695, %v2919_v61 }
 0x3e1   : > { %v4675_v1 = vpop.eup %4674  ;;  %v3041_v52 = vadd.f32 1.0, %v4673_v62  ;;  %4686 = vpow2.f32 %v3540_v29  ;;  %v3542_v54 = vmul.f32 -1.442695, %v2918_v3  ;;  %v4308_v32 = vpop.f32.mrb[42].mxu1 }
 0x3e2   : > { %v3040_v14 = vadd.f32 1.0, %v4675_v1  ;;  %4688 = vpow2.f32 %v3543_v31  ;;  %v2921_v2 = vadd.f32 %v4308_v32, %v5932_v5  ;;  %v2794_v56 = vpop.f32.mrb[43].mxu1 }
 0x3e3   : > { %4690 = vrcp.f32 %v3041_v52  ;;  %v2920_v12 = vadd.f32 %v5932_v5, %v2794_v56 }
 0x3e4   : > { %v4677_v6 = vpop.eup %4676  ;;  %4692 = vrcp.f32 %v3040_v14  ;;  %v3545_v34 = vmul.f32 -1.442695, %v2921_v2 }
 0x3e5   : > { %v4679_v50 = vpop.eup %4678  ;;  %v3043_v53 = vadd.f32 1.0, %v4677_v6  ;;  %4694 = vpow2.f32 %v3542_v54  ;;  %v3544_v49 = vmul.f32 -1.442695, %v2920_v12  ;;  %v4311_v35 = vpop.f32.mrb[44].mxu1 }
 0x3e6   : > { %v3042_v28 = vadd.f32 1.0, %v4679_v50  ;;  %4696 = vpow2.f32 %v3545_v34  ;;  %v2923_v47 = vadd.f32 %v4311_v35, %v5932_v5  ;;  %v2804_v58 = vpop.f32.mrb[45].mxu1 }
 0x3e7   : > { %4698 = vrcp.f32 %v3043_v53  ;;  %v2922_v8 = vadd.f32 %v5932_v5, %v2804_v58 }
 0x3e8   : > { %v4681_v59 = vpop.eup %4680  ;;  %4700 = vrcp.f32 %v3042_v28  ;;  %v3547_v7 = vmul.f32 -1.442695, %v2923_v47 }
 0x3e9   : > { %v4683_v36 = vpop.eup %4682  ;;  %v3045_v43 = vadd.f32 1.0, %v4681_v59  ;;  %4702 = vpow2.f32 %v3544_v49  ;;  %v3546_v63 = vmul.f32 -1.442695, %v2922_v8  ;;  %v4314_v60 = vpop.f32.mrb[46].mxu1 }
 0x3ea   : > { %v4685_v0 = vpop.eup %4684  ;;  %v3141_v37 = vmul.f32 %v4683_v36, %v5951_v45  ;;  %4704 = vpow2.f32 %v3547_v7  ;;  %v2925_v33 = vadd.f32 %v4314_v60, %v5932_v5  ;;  %v2814_v51 = vpop.f32.mrb[47].mxu1 }
 0x3eb   : > { %v4687_v30 = vpop.eup %4686  ;;  %v3140_v4 = vmul.f32 %v4685_v0, %v5951_v45  ;;  %4706 = vrcp.f32 %v3045_v43  ;;  %v2924_v9 = vadd.f32 %v5932_v5, %v2814_v51 }
 0x3ec   : > { %v4689_v10 = vpop.eup %4688  ;;  %3173 = vst.msk [vmem:[%s5958_s4 + $0x8] sm:$0xff] %vm753_vm1, %v3141_v37  ;;  %v3044_v20 = vadd.f32 1.0, %v4687_v30  ;;  %4708 = vpow2.f32 %v3546_v63  ;;  %v3549_v39 = vmul.f32 -1.442695, %v2925_v33 }
 0x3ed   : > { %v4691_v46 = vpop.eup %4690  ;;  %3172 = vst.msk [vmem:[%s5958_s4] sm:$0xff] %vm753_vm1, %v3140_v4  ;;  %v3047_v11 = vadd.f32 1.0, %v4689_v10  ;;  %v3548_v38 = vmul.f32 -1.442695, %v2924_v9  ;;  %v4317_v15 = vpop.f32.mrb[48].mxu1 }
 0x3ee   : > { %v4693_v16 = vpop.eup %4692  ;;  %v3143_v40 = vmul.f32 %v4691_v46, %v5951_v45  ;;  %4710 = vrcp.f32 %v3044_v20  ;;  %v2927_v18 = vadd.f32 %v4317_v15, %v5932_v5  ;;  %v2824_v19 = vpop.f32.mrb[49].mxu1 }
 0x3ef   : > { %v4695_v48 = vpop.eup %4694  ;;  %v3142_v13 = vmul.f32 %v4693_v16, %v5951_v45  ;;  %4712 = vrcp.f32 %v3047_v11  ;;  %v2926_v21 = vadd.f32 %v5932_v5, %v2824_v19 }
 0x3f0   : > { %v4697_v24 = vpop.eup %4696  ;;  %3175 = vst.msk [vmem:[%s5958_s4 + $0x18] sm:$0xff] %vm753_vm1, %v3143_v40  ;;  %v3046_v17 = vadd.f32 1.0, %v4695_v48  ;;  %4714 = vpow2.f32 %v3549_v39  ;;  %v3551_v41 = vmul.f32 -1.442695, %v2927_v18 }
 0x3f1   : > { %v4699_v22 = vpop.eup %4698  ;;  %3174 = vst.msk [vmem:[%s5958_s4 + $0x10] sm:$0xff] %vm753_vm1, %v3142_v13  ;;  %v3049_v23 = vadd.f32 1.0, %v4697_v24  ;;  %4716 = vpow2.f32 %v3548_v38  ;;  %v3550_v25 = vmul.f32 -1.442695, %v2926_v21  ;;  %v4320_v42 = vpop.f32.mrb[50].mxu1 }
 0x3f2   : > { %v4701_v26 = vpop.eup %4700  ;;  %v3145_v27 = vmul.f32 %v4699_v22, %v5951_v45  ;;  %4718 = vrcp.f32 %v3046_v17  ;;  %v2929_v29 = vadd.f32 %v4320_v42, %v5932_v5  ;;  %v2834_v55 = vpop.f32.mrb[51].mxu1 }
 0x3f3   : > { %v4703_v57 = vpop.eup %4702  ;;  %v3144_v61 = vmul.f32 %v4701_v26, %v5951_v45  ;;  %4720 = vrcp.f32 %v3049_v23  ;;  %v2928_v44 = vadd.f32 %v5932_v5, %v2834_v55 }
 0x3f4   : > { %v4705_v3 = vpop.eup %4704  ;;  %3177 = vst.msk [vmem:[%s5958_s4 + $0x28] sm:$0xff] %vm753_vm1, %v3145_v27  ;;  %v3048_v62 = vadd.f32 1.0, %v4703_v57  ;;  %4722 = vpow2.f32 %v3551_v41  ;;  %v3553_v31 = vmul.f32 -1.442695, %v2929_v29 }
 0x3f5   : > { %v4707_v1 = vpop.eup %4706  ;;  %3176 = vst.msk [vmem:[%s5958_s4 + $0x20] sm:$0xff] %vm753_vm1, %v3144_v61  ;;  %v3051_v52 = vadd.f32 1.0, %v4705_v3  ;;  %4724 = vpow2.f32 %v3550_v25  ;;  %v4323_v54 = vpop.f32.mrb[52].mxu1  ;;  %v3552_v2 = vmul.f32 -1.442695, %v2928_v44 }
 0x3f6   : > { %v4709_v32 = vpop.eup %4708  ;;  %v3147_v14 = vmul.f32 %v4707_v1, %v5951_v45  ;;  %4726 = vrcp.f32 %v3048_v62  ;;  %v2931_v56 = vadd.f32 %v4323_v54, %v5932_v5  ;;  %v2844_v12 = vpop.f32.mrb[53].mxu1 }
 0x3f7   : > { %4728 = vrcp.f32 %v3051_v52  ;;  %v3050_v6 = vadd.f32 1.0, %v4709_v32  ;;  %v2930_v34 = vadd.f32 %v5932_v5, %v2844_v12 }
 0x3f8   : > { %v4711_v50 = vpop.eup %4710  ;;  %3179 = vst.msk [vmem:[%s5958_s4 + $0x38] sm:$0xff] %vm753_vm1, %v3147_v14  ;;  %4730 = vpow2.f32 %v3553_v31  ;;  %v3555_v53 = vmul.f32 -1.442695, %v2931_v56 }
 0x3f9   : > { %v4713_v49 = vpop.eup %4712  ;;  %v3146_v35 = vmul.f32 %v4711_v50, %v5951_v45  ;;  %4732 = vrcp.f32 %v3050_v6  ;;  %v3554_v28 = vmul.f32 -1.442695, %v2930_v34 }
 0x3fa   : > { %v4715_v47 = vpop.eup %4714  ;;  %v3149_v58 = vmul.f32 %v4713_v49, %v5951_v45  ;;  %4734 = vpow2.f32 %v3552_v2 }
 0x3fb   : > { %v4717_v8 = vpop.eup %4716  ;;  %3178 = vst.msk [vmem:[%s5958_s4 + $0x30] sm:$0xff] %vm753_vm1, %v3146_v35  ;;  %v3053_v59 = vadd.f32 1.0, %v4715_v47  ;;  %4736 = vpow2.f32 %v3555_v53 }
 0x3fc   : > { %v4719_v7 = vpop.eup %4718  ;;  %3181 = vst.msk [vmem:[%s5958_s4 + $0x48] sm:$0xff] %vm753_vm1, %v3149_v58  ;;  %v3052_v36 = vadd.f32 1.0, %v4717_v8  ;;  %4738 = vpow2.f32 %v3554_v28 }
 0x3fd   : > { %v4721_v43 = vpop.eup %4720  ;;  %v3148_v63 = vmul.f32 %v4719_v7, %v5951_v45  ;;  %4740 = vrcp.f32 %v3053_v59 }
 0x3fe   : > { %v4723_v60 = vpop.eup %4722  ;;  %v3151_v0 = vmul.f32 %v4721_v43, %v5951_v45  ;;  %4742 = vrcp.f32 %v3052_v36 }
 0x3ff   : > { %v4725_v37 = vpop.eup %4724  ;;  %3180 = vst.msk [vmem:[%s5958_s4 + $0x40] sm:$0xff] %vm753_vm1, %v3148_v63  ;;  %v3055_v33 = vadd.f32 1.0, %v4723_v60 }
 0x400   : > { %v4727_v51 = vpop.eup %4726  ;;  %3183 = vst.msk [vmem:[%s5958_s4 + $0x58] sm:$0xff] %vm753_vm1, %v3151_v0  ;;  %v3054_v30 = vadd.f32 1.0, %v4725_v37 }
 0x401   : > { %v4729_v4 = vpop.eup %4728  ;;  %v3150_v9 = vmul.f32 %v4727_v51, %v5951_v45  ;;  %4744 = vrcp.f32 %v3055_v33 }
 0x402   : > { %v4731_v10 = vpop.eup %4730  ;;  %v3153_v20 = vmul.f32 %v4729_v4, %v5951_v45  ;;  %4746 = vrcp.f32 %v3054_v30 }
 0x403   : > { %v4733_v39 = vpop.eup %4732  ;;  %3182 = vst.msk [vmem:[%s5958_s4 + $0x50] sm:$0xff] %vm753_vm1, %v3150_v9  ;;  %v3057_v46 = vadd.f32 1.0, %v4731_v10 }
 0x404   : > { %v4735_v11 = vpop.eup %4734  ;;  %3185 = vst.msk [vmem:[%s5958_s4 + $0x68] sm:$0xff] %vm753_vm1, %v3153_v20  ;;  %v3152_v38 = vmul.f32 %v4733_v39, %v5951_v45 }
 0x405   : > { %v4737_v15 = vpop.eup %4736  ;;  %4748 = vrcp.f32 %v3057_v46  ;;  %v3056_v16 = vadd.f32 1.0, %v4735_v11 }
 0x406   : > { %v4739_v40 = vpop.eup %4738  ;;  %3184 = vst.msk [vmem:[%s5958_s4 + $0x60] sm:$0xff] %vm753_vm1, %v3152_v38  ;;  %v3059_v18 = vadd.f32 1.0, %v4737_v15 }
 0x407   : > { %v4741_v19 = vpop.eup %4740  ;;  %4750 = vrcp.f32 %v3056_v16  ;;  %v3058_v48 = vadd.f32 1.0, %v4739_v40 }
 0x408   : > { %v4743_v13 = vpop.eup %4742  ;;  %v3155_v21 = vmul.f32 %v4741_v19, %v5951_v45  ;;  %4752 = vrcp.f32 %v3059_v18 }
 0x409   : > { %v3154_v24 = vmul.f32 %v4743_v13, %v5951_v45  ;;  %4754 = vrcp.f32 %v3058_v48 }
 0x40a   : > { %3187 = vst.msk [vmem:[%s5958_s4 + $0x78] sm:$0xff] %vm753_vm1, %v3155_v21 }
 0x40b   : > { %v4745_v17 = vpop.eup %4744  ;;  %3186 = vst.msk [vmem:[%s5958_s4 + $0x70] sm:$0xff] %vm753_vm1, %v3154_v24  ;;  %v4326_v41 = vpop.f32.mrb[54].mxu1 }
 0x40c   : > { %v4747_v22 = vpop.eup %4746  ;;  %v3157_v23 = vmul.f32 %v4745_v17, %v5951_v45  ;;  %v2933_v25 = vadd.f32 %v4326_v41, %v5932_v5  ;;  %v2854_v42 = vpop.f32.mrb[55].mxu1 }
 0x40d   : > { %v3156_v26 = vmul.f32 %v4747_v22, %v5951_v45  ;;  %v2932_v27 = vadd.f32 %v5932_v5, %v2854_v42 }
 0x40e   : > { %3189 = vst.msk [vmem:[%s5958_s4 + $0x88] sm:$0xff] %vm753_vm1, %v3157_v23  ;;  %v3557_v29 = vmul.f32 -1.442695, %v2933_v25 }
 0x40f   : > { %v4749_v55 = vpop.eup %4748  ;;  %3188 = vst.msk [vmem:[%s5958_s4 + $0x80] sm:$0xff] %vm753_vm1, %v3156_v26  ;;  %v3556_v57 = vmul.f32 -1.442695, %v2932_v27  ;;  %v4329_v61 = vpop.f32.mrb[56].mxu1 }
 0x410   : > { %v3159_v44 = vmul.f32 %v4749_v55, %v5951_v45  ;;  %4756 = vpow2.f32 %v3557_v29  ;;  %v2935_v3 = vadd.f32 %v4329_v61, %v5932_v5  ;;  %v2864_v62 = vpop.f32.mrb[57].mxu1 }
 0x411   : > { %v4751_v31 = vpop.eup %4750  ;;  %4758 = vpow2.f32 %v3556_v57  ;;  %v2934_v1 = vadd.f32 %v5932_v5, %v2864_v62 }
 0x412   : > { %v4753_v52 = vpop.eup %4752  ;;  %3191 = vst.msk [vmem:[%s5958_s4 + $0x98] sm:$0xff] %vm753_vm1, %v3159_v44  ;;  %v3158_v54 = vmul.f32 %v4751_v31, %v5951_v45  ;;  %v3559_v32 = vmul.f32 -1.442695, %v2935_v3 }
 0x413   : > { %v4755_v14 = vpop.eup %4754  ;;  %v3161_v2 = vmul.f32 %v4753_v52, %v5951_v45  ;;  %v3558_v56 = vmul.f32 -1.442695, %v2934_v1  ;;  %v4332_v12 = vpop.f32.mrb[58].mxu1 }
 0x414   : > { %3190 = vst.msk [vmem:[%s5958_s4 + $0x90] sm:$0xff] %vm753_vm1, %v3158_v54  ;;  %v3160_v6 = vmul.f32 %v4755_v14, %v5951_v45  ;;  %4760 = vpow2.f32 %v3559_v32  ;;  %v2937_v34 = vadd.f32 %v4332_v12, %v5932_v5  ;;  %v2874_v50 = vpop.f32.mrb[59].mxu1 }
 0x415   : > { %3193 = vst.msk [vmem:[%s5958_s4 + $0xa8] sm:$0xff] %vm753_vm1, %v3161_v2  ;;  %4762 = vpow2.f32 %v3558_v56  ;;  %v2936_v53 = vadd.f32 %v5932_v5, %v2874_v50 }
 0x416   : > { %3192 = vst.msk [vmem:[%s5958_s4 + $0xa0] sm:$0xff] %vm753_vm1, %v3160_v6  ;;  %v3561_v49 = vmul.f32 -1.442695, %v2937_v34 }
 0x417   : > { %v3560_v35 = vmul.f32 -1.442695, %v2936_v53  ;;  %v4335_v28 = vpop.f32.mrb[60].mxu1 }
 0x418   : > { %4764 = vpow2.f32 %v3561_v49  ;;  %v2939_v47 = vadd.f32 %v4335_v28, %v5932_v5  ;;  %v2884_v58 = vpop.f32.mrb[61].mxu1 }
 0x419   : > { %4766 = vpow2.f32 %v3560_v35  ;;  %v2938_v8 = vadd.f32 %v5932_v5, %v2884_v58 }
 0x41a   : > { %v4757_v59 = vpop.eup %4756  ;;  %v3563_v7 = vmul.f32 -1.442695, %v2939_v47 }
 0x41b   : > { %v4759_v36 = vpop.eup %4758  ;;  %v3061_v43 = vadd.f32 1.0, %v4757_v59  ;;  %v3562_v63 = vmul.f32 -1.442695, %v2938_v8  ;;  %v4338_v60 = vpop.f32.mrb[62].mxu1 }
 0x41c   : > { %v3060_v0 = vadd.f32 1.0, %v4759_v36  ;;  %4768 = vpow2.f32 %v3563_v7  ;;  %v2941_v37 = vadd.f32 %v4338_v60, %v5932_v5  ;;  %v2894_v33 = vpop.f32.mrb[63].mxu1 }
 0x41d   : > { %4770 = vrcp.f32 %v3061_v43  ;;  %v2940_v51 = vadd.f32 %v5932_v5, %v2894_v33 }
 0x41e   : > { %v4761_v30 = vpop.eup %4760  ;;  %4772 = vrcp.f32 %v3060_v0  ;;  %v3565_v4 = vmul.f32 -1.442695, %v2941_v37 }
 0x41f   : > { %v4763_v9 = vpop.eup %4762  ;;  %v3063_v10 = vadd.f32 1.0, %v4761_v30  ;;  %4774 = vpow2.f32 %v3562_v63  ;;  %v3564_v20 = vmul.f32 -1.442695, %v2940_v51 }
 0x420   : > { %v3062_v39 = vadd.f32 1.0, %v4763_v9  ;;  %4776 = vpow2.f32 %v3565_v4 }
 0x421   : > { %4778 = vrcp.f32 %v3063_v10 }
 0x422   : > { %v4765_v46 = vpop.eup %4764  ;;  %4780 = vrcp.f32 %v3062_v39 }
 0x423   : > { %v4767_v11 = vpop.eup %4766  ;;  %v3065_v38 = vadd.f32 1.0, %v4765_v46  ;;  %4782 = vpow2.f32 %v3564_v20 }
 0x424   : > { %v3064_v15 = vadd.f32 1.0, %v4767_v11 }
 0x425   : > { %4784 = vrcp.f32 %v3065_v38 }
 0x426   : > { %v4769_v5 = vpop.eup %4768  ;;  %4786 = vrcp.f32 %v3064_v15 }
 0x427   : > { %v4771_v16 = vpop.eup %4770  ;;  %v3067_v40 = vadd.f32 1.0, %v4769_v5 }
 0x428   : > { %v4773_v18 = vpop.eup %4772  ;;  %v3163_v19 = vmul.f32 %v4771_v16, %v5951_v45 }
 0x429   : > { %v4775_v48 = vpop.eup %4774  ;;  %v3162_v13 = vmul.f32 %v4773_v18, %v5951_v45  ;;  %4788 = vrcp.f32 %v3067_v40 }
 0x42a   : > { %v4777_v21 = vpop.eup %4776  ;;  %3195 = vst.msk [vmem:[%s5958_s4 + $0xb8] sm:$0xff] %vm753_vm1, %v3163_v19  ;;  %v3066_v24 = vadd.f32 1.0, %v4775_v48 }
 0x42b   : > { %v4779_v17 = vpop.eup %4778  ;;  %3194 = vst.msk [vmem:[%s5958_s4 + $0xb0] sm:$0xff] %vm753_vm1, %v3162_v13  ;;  %v3069_v41 = vadd.f32 1.0, %v4777_v21 }
 0x42c   : > { %v4781_v22 = vpop.eup %4780  ;;  %v3165_v23 = vmul.f32 %v4779_v17, %v5951_v45  ;;  %4790 = vrcp.f32 %v3066_v24 }
 0x42d   : > { %v4783_v25 = vpop.eup %4782  ;;  %v3164_v42 = vmul.f32 %v4781_v22, %v5951_v45  ;;  %4792 = vrcp.f32 %v3069_v41 }
 0x42e   : > { %3197 = vst.msk [vmem:[%s5958_s4 + $0xc8] sm:$0xff] %vm753_vm1, %v3165_v23  ;;  %v3068_v26 = vadd.f32 1.0, %v4783_v25 }
 0x42f   : > { %v4785_v27 = vpop.eup %4784  ;;  %3196 = vst.msk [vmem:[%s5958_s4 + $0xc0] sm:$0xff] %vm753_vm1, %v3164_v42 }
 0x430   : > { %v4787_v29 = vpop.eup %4786  ;;  %v3167_v55 = vmul.f32 %v4785_v27, %v5951_v45  ;;  %4794 = vrcp.f32 %v3068_v26 }
 0x431   : > { %v3166_v57 = vmul.f32 %v4787_v29, %v5951_v45 }
 0x432   : > { %3199 = vst.msk [vmem:[%s5958_s4 + $0xd8] sm:$0xff] %vm753_vm1, %v3167_v55 }
 0x433   : > { %v4789_v61 = vpop.eup %4788  ;;  %3198 = vst.msk [vmem:[%s5958_s4 + $0xd0] sm:$0xff] %vm753_vm1, %v3166_v57 }
 0x434   : > { %v3169_v44 = vmul.f32 %v4789_v61, %v5951_v45 }
 0x436   : > { %v4791_v3 = vpop.eup %4790  ;;  %3201 = vst.msk [vmem:[%s5958_s4 + $0xe8] sm:$0xff] %vm753_vm1, %v3169_v44 }
 0x437   : > { %v4793_v62 = vpop.eup %4792  ;;  %v3168_v31 = vmul.f32 %v4791_v3, %v5951_v45 }
 0x438   : > { %v3171_v1 = vmul.f32 %v4793_v62, %v5951_v45 }
 0x439   : > { %3200 = vst.msk [vmem:[%s5958_s4 + $0xe0] sm:$0xff] %vm753_vm1, %v3168_v31 }
 0x43a   : > { %v4795_v52 = vpop.eup %4794  ;;  %3203 = vst.msk [vmem:[%s5958_s4 + $0xf8] sm:$0xff] %vm753_vm1, %v3171_v1 }
 0x43b   : > { %v3170_v54 = vmul.f32 %v4795_v52, %v5951_v45 }
 0x43d   : > { %3202 = vst.msk [vmem:[%s5958_s4 + $0xf0] sm:$0xff] %vm753_vm1, %v3170_v54 }
 0x43e PF: > { %p4617_p4 = scmp.ge.s32.totalorder %s4875_s23, 2  ;;  %s3260_s26 = sand.u32 1, %s4855_s18  }
 0x43f   : > { %s3261_s17 = scalar_lea.sflag [#allocation3], %s3260_s26 }
 0x440   : > { %p4614_p2 = pnand %p4617_p4, %p5007_p8 }
 0x442   : > { %4850 = dma.done.wait (!%p4614_p2), %s3261_s17, 4096  }
 0x443   : > { %4852 = vsyncadd (!%p4614_p2), %s3261_s17, 4294963200  ;;  %s29_s23 = sadd.s32 1, %s4875_s23   ;;  %s6130_s21 = sld [smem:[#allocation5_spill]] }
 0x444   : > { %p26_p3 = scmp.ge.s32.totalorder %s29_s23, 4   ;;  %s6131_s22 = sld [smem:[#allocation6_spill]] }
 0x445   : > { %s6132_s18 = smov %s4859_s19  ;;  %s6133_s19 = smov %s4863_s20 }
 0x446   : > { %s6134_s20 = smov %s5013_s16  ;;  %28 = sbr.rel (!%p26_p3) target bundleno = 11 (0xb), region = 138 }
 0x44d   :  { %3266 = vsyncpa [#allocation3], 1 }
 0x44e   :  { %3268 = vsyncpa [#allocation3 + $0x1], 1 }

</bundles_post_ra>
